<compile_context>
chip_gen: v7x
topology: tpu7x:2x2x1
jax: 0.10.0
libtpu: 0.0.40
codegen_flags: <defaults>
</compile_context>

<pallas_src>
import math
from functools import partial

import jax
import jax.numpy as jnp
from jax.experimental import pallas as pl
from jax.experimental.pallas import tpu as pltpu


# ----------------------------------------------------------------------------
# Weight-slab layout (shared by the packer and the kernel).
# ----------------------------------------------------------------------------
def _slab_rows(Cin, C):
    K9 = 9 * Cin + 1          # 9 taps * Cin channels + ones row
    ns = 2 * C
    return [("w0", C + 1, K9),        # conv0_1 weight+bias (+ones-selector row)
            ("wspr", 4 * C, C + 1),   # conv_state|proj|reproj (BN+bias+1/HW folded)
            ("g1_w1t", C, C), ("g1_b1", 1, C), ("g1_w2", ns, ns),
            ("g2_w1t", C, C), ("g2_b1", 1, C), ("g2_w2", ns, ns),
            ("wf", C, ns)]            # fc_2 with blocker BN scale folded


# ----------------------------------------------------------------------------
# Fused kernel: one grid step handles Bs batch elements (folded into lanes).
# ----------------------------------------------------------------------------
def _mgr_kernel(Cin, C, HW, Bs, cols_ref, slab_ref, o_ref):
    num_s = 2 * C
    L = Bs * HW

    # Static views into the single packed weight slab.
    slab = slab_ref[...]
    offs, r = {}, 0
    for name, nr, nc in _slab_rows(Cin, C):
        offs[name] = (r, nr, nc)
        r += nr

    def W(name):
        r0, nr, nc = offs[name]
        return slab[r0:r0 + nr, :nc]

    cols = cols_ref[0]                                              # (K9, L)

    # conv0_1: 3x3 conv + bias + ReLU as ONE K=37 matmul.  Last weight row is
    # a selector that re-emits the constant-ones row through the ReLU so the
    # next stage's bias also rides the MXU.
    x0a = jnp.maximum(jnp.dot(W("w0"), cols,
                              preferred_element_type=jnp.float32), 0.0)  # (C+1, L)
    x0 = x0a[:C]                                                    # (C, L)

    # conv_state | conv_proj | conv_reproj (BN, bias, 1/HW pre-folded), ReLU.
    y = jnp.maximum(jnp.dot(W("wspr"), x0a,
                            preferred_element_type=jnp.float32), 0.0)    # (4C, L)
    x_state = y[:num_s]                                             # (2C, L)
    x_proj = y[num_s:num_s + C]                                     # (C,  L) already /HW
    x_rproj = y[num_s + C:]                                         # (C,  L)

    # GCN blocks: tiny (2C, C) operands -> unrolled VPU broadcast-FMAs,
    # avoiding 4 back-to-back data-dependent MXU round trips.
    def gcn(h, w1t, b1, w2):
        t = h + b1                                                  # residual + bias
        for k in range(C):                                          # t += h @ w1t
            t = t + h[:, k:k + 1] * w1t[k:k + 1, :]
        t = jnp.where(t >= 0.0, t, 0.2 * t)                         # LeakyReLU(0.2)
        o = jnp.zeros_like(h)
        for k in range(num_s):                                      # o = w2 @ t
            o = o + w2[:, k:k + 1] * t[k:k + 1, :]
        return o

    g1 = (W("g1_w1t"), W("g1_b1"), W("g1_w2"))
    g2 = (W("g2_w1t"), W("g2_b1"), W("g2_w2"))

    xst_parts = []
    for b in range(Bs):                                             # static, Bs <= B
        sl = slice(b * HW, (b + 1) * HW)                            # 128-aligned lanes
        xn = jax.lax.dot_general(                                   # (2C, C) on MXU
            x_state[:, sl], x_proj[:, sl], (((1,), (1,)), ((), ())),
            preferred_element_type=jnp.float32)
        xn = gcn(xn, *g1)
        xn = gcn(xn, *g2)
        xst_parts.append(jnp.dot(xn, x_rproj[:, sl],                # (2C, HW) on MXU
                                 preferred_element_type=jnp.float32))
    xst = xst_parts[0] if Bs == 1 else jnp.concatenate(xst_parts, axis=1)  # (2C, L)

    # out = x0 + blocker(fc_2(x_state2)); blocker scale folded into wf.
    out = x0 + jnp.dot(W("wf"), xst, preferred_element_type=jnp.float32)
    o_ref[0] = out                                                  # lane-dense store


# ----------------------------------------------------------------------------
# Host-side helpers
# ----------------------------------------------------------------------------
def _default_batch_per_step(B):
    """v7x (2 TensorCores): one batch element per 'parallel' grid step.
    v5e/v6e (1 TensorCore): fold the whole batch into a single grid step."""
    kind = ""
    try:
        kind = jax.devices()[0].device_kind.lower()
    except Exception:
        pass
    if ("v7" in kind or "7x" in kind) and B % 2 == 0:
        return 1
    return B


def _build_slab(p, Cin, C, HW):
    """Pack every weight/bias into one (rows, 128) f32 slab (single DMA)."""
    f32 = jnp.float32
    num_s = 2 * C
    K9 = 9 * Cin + 1

    # conv0_1 weight (tap-major columns to match the im2col row order) + bias
    # column + a selector row that passes the constant-ones row through ReLU.
    w0m = p["w0"].transpose(0, 2, 3, 1).reshape(C, 9 * Cin)
    w0b = jnp.concatenate([w0m, p["b0"][:, None]], axis=1)              # (C, K9)
    ones_sel = jnp.zeros((1, K9), f32).at[0, K9 - 1].set(1.0)
    w0_aug = jnp.concatenate([w0b, ones_sel], axis=0)                   # (C+1, K9)

    # Fused state|proj|reproj weight, bias column appended, 1/HW folded into
    # the proj rows (valid because ReLU(s*z) = s*ReLU(z) for s > 0).
    scale = jnp.ones((4 * C, 1), f32).at[num_s:num_s + C].set(1.0 / HW)
    wspr_aug = jnp.concatenate([p["wspr"], p["bspr"][:, None]], axis=1) * scale

    pieces = {
        "w0": w0_aug, "wspr": wspr_aug,
        "g1_w1t": p["g1_w1t"], "g1_b1": p["g1_b1"][None, :], "g1_w2": p["g1_w2"],
        "g2_w1t": p["g2_w1t"], "g2_b1": p["g2_b1"][None, :], "g2_w2": p["g2_w2"],
        "wf": p["wf"],
    }
    rows = []
    for name, nr, nc in _slab_rows(Cin, C):
        a = pieces[name].astype(f32)
        assert a.shape == (nr, nc), (name, a.shape, (nr, nc))
        rows.append(jnp.pad(a, ((0, 0), (0, 128 - nc))))
    slab = jnp.concatenate(rows, axis=0)
    return jnp.pad(slab, ((0, (-slab.shape[0]) % 8), (0, 0)))           # (56, 128)


def mgr_forward(x_nchw, params, C, batch_per_step=None):
    B, Cin, H, W = x_nchw.shape
    HW = H * W
    Bs = _default_batch_per_step(B) if batch_per_step is None else batch_per_step
    assert B % Bs == 0
    G = B // Bs
    L = Bs * HW
    K9 = 9 * Cin + 1

    # Zero-padded im2col (tap-major rows) + constant-ones row, batch folded
    # into the lane axis (Bs elements per grid step).  ~76 KB HBM: trivial.
    x = x_nchw.astype(jnp.float32)
    xp = jnp.pad(x, ((0, 0), (0, 0), (1, 1), (1, 1)))
    taps = [xp[:, :, kh:kh + H, kw:kw + W].reshape(B, Cin, HW)
            for kh in range(3) for kw in range(3)]
    cols = jnp.concatenate(taps + [jnp.ones((B, 1, HW), jnp.float32)], axis=1)
    cols = cols.reshape(G, Bs, K9, HW).transpose(0, 2, 1, 3).reshape(G, K9, L)

    slab = _build_slab(params, Cin, C, HW)

    out = pl.pallas_call(
        partial(_mgr_kernel, Cin, C, HW, Bs),
        out_shape=jax.ShapeDtypeStruct((G, C, L), jnp.float32),
        grid=(G,),
        in_specs=[pl.BlockSpec((1, K9, L), lambda g: (g, 0, 0)),
                  pl.BlockSpec(slab.shape, lambda g: (0, 0))],
        out_specs=pl.BlockSpec((1, C, L), lambda g: (g, 0, 0)),
        compiler_params=pltpu.CompilerParams(
            dimension_semantics=("parallel",)),
    )(cols, slab)

    return out.reshape(G, C, Bs, HW).transpose(0, 2, 1, 3).reshape(B, C, H, W)


# ----------------------------------------------------------------------------
# Parameter initialization (deterministic, synthetic; BN folded, eval mode)
# ----------------------------------------------------------------------------
def init_params(key, Cin, C):
    ks = iter(jax.random.split(key, 32))
    eps = 1e-5
    num_s, num_n = 2 * C, C

    def normal(shape, std):
        return std * jax.random.normal(next(ks), shape, jnp.float32)

    p = {}
    # conv0_1: Conv2d(Cin, C, 3x3, pad=1) + bias, ReLU (no BN).
    p["w0"] = normal((C, Cin, 3, 3), math.sqrt(2.0 / (Cin * 9)))
    p["b0"] = normal((C,), 0.02)

    # 1x1 conv + BatchNorm (eval, rm=0, rv=1): fold scale into the weight.
    def conv1x1_bn(cin, cout):
        w = normal((cout, cin), math.sqrt(2.0 / cin))
        b = normal((cout,), 0.02)
        gamma = 1.0 + normal((cout,), 0.02)
        beta = jnp.zeros((cout,), jnp.float32)
        s = gamma / jnp.sqrt(1.0 + eps)
        return w * s[:, None], b * s + beta

    ws, ss = conv1x1_bn(C, num_s)      # conv_state
    wp, sp = conv1x1_bn(C, num_n)      # conv_proj
    wr, sr = conv1x1_bn(C, num_n)      # conv_reproj
    p["wspr"] = jnp.concatenate([ws, wp, wr], axis=0)                 # (4C, C)
    p["bspr"] = jnp.concatenate([ss, sp, sr], axis=0)                 # (4C,)

    # GCN1 / GCN2: conv1 Conv1d(num_n, num_n, bias) ; conv2 Conv1d(num_s, num_s)
    for g in ("g1", "g2"):
        w1 = normal((num_n, num_n), math.sqrt(1.0 / num_n))
        p[f"{g}_w1t"] = w1.T                                          # (C, C)
        p[f"{g}_b1"] = normal((num_n,), 0.02)                         # (C,)
        p[f"{g}_w2"] = normal((num_s, num_s), math.sqrt(1.0 / num_s))

    # fc_2 (1x1, no bias) + blocker BN (gamma=1, beta=0, eval) folded.
    wf = normal((C, num_s), math.sqrt(2.0 / num_s))
    p["wf"] = wf / jnp.sqrt(1.0 + eps)                                # (C, 2C)
    return p


# ----------------------------------------------------------------------------
# Pure-JAX reference (mirrors the PyTorch math; no algebraic folds)
# ----------------------------------------------------------------------------
def mgr_reference(x_nchw, p, C):
    B, Cin, H, W = x_nchw.shape
    HW = H * W
    num_s = 2 * C
    hp = jax.lax.Precision.HIGHEST
    x = x_nchw.astype(jnp.float32)

    y = jax.lax.conv_general_dilated(
        x, p["w0"], window_strides=(1, 1), padding=((1, 1), (1, 1)),
        dimension_numbers=("NCHW", "OIHW", "NCHW"), precision=hp)
    x0 = jnp.maximum(y + p["b0"].reshape(1, C, 1, 1), 0.0)

    x0f = x0.reshape(B, C, HW)
    yspr = jnp.einsum("oc,bcp->bop", p["wspr"], x0f, precision=hp)
    yspr = jnp.maximum(yspr + p["bspr"][None, :, None], 0.0)
    xs, xpj, xr = yspr[:, :num_s], yspr[:, num_s:num_s + C], yspr[:, num_s + C:]

    xn = jnp.einsum("bsp,bnp->bsn", xs, xpj, precision=hp) / HW

    def gcn(h, w1t, b1, w2):
        t = jnp.einsum("bsn,nm->bsm", h, w1t, precision=hp) + b1[None, None, :] + h
        t = jnp.where(t >= 0.0, t, 0.2 * t)
        return jnp.einsum("ij,bjn->bin", w2, t, precision=hp)

    xn = gcn(xn, p["g1_w1t"], p["g1_b1"], p["g1_w2"])
    xn = gcn(xn, p["g2_w1t"], p["g2_b1"], p["g2_w2"])

    xst = jnp.einsum("bsn,bnp->bsp", xn, xr, precision=hp)
    out = x0f + jnp.einsum("cs,bsp->bcp", p["wf"], xst, precision=hp)
    return out.reshape(B, C, H, W)


# ----------------------------------------------------------------------------
if __name__ == "__main__":
    B, Cin, H, W = 2, 4, 16, 16
    Cout = 4   # MGR_Module(in_channels=4, out_channels=4)

    key = jax.random.PRNGKey(0)
    kx, kp = jax.random.split(key)
    x = jax.random.normal(kx, (B, Cin, H, W), jnp.float32)
    params = init_params(kp, Cin, Cout)

    fwd = jax.jit(partial(mgr_forward, params=params, C=Cout))
    out = jax.block_until_ready(fwd(x))

    assert out.shape == (B, Cout, H, W), out.shape
    assert bool(jnp.all(jnp.isfinite(out)))

    ref = jax.block_until_ready(mgr_reference(x, params, Cout))
    max_err = float(jnp.max(jnp.abs(out - ref)))
    assert jnp.allclose(out, ref, rtol=2e-2, atol=2e-2), max_err

    print("KERNEL_OK")
</pallas_src>

<mosaic_0001>
module attributes {stable_mosaic.version = 11 : i64} {
  func.func @_mgr_kernel(%arg0: i32, %arg1: memref<1x37x512xf32, #tpu.memory_space<vmem>>, %arg2: memref<56x128xf32, #tpu.memory_space<vmem>>, %arg3: memref<1x4x512xf32, #tpu.memory_space<vmem>>) attributes {dimension_semantics = [#tpu.dimension_semantics<parallel>], iteration_bounds = array<i64: 1>, scalar_prefetch = 0 : i64, scratch_operands = 0 : i64, tpu.core_type = #tpu.core_type<tc>, window_params = [{transform_indices = @transform_0, window_bounds = array<i64: 1, 37, 512>}, {pipeline_mode = #tpu.pipeline_mode<synchronous>, transform_indices = @transform_1, window_bounds = array<i64: 56, 128>}, {transform_indices = @transform_2, window_bounds = array<i64: 1, 4, 512>}]} {
    %c0 = arith.constant 0 : index
    %c0_0 = arith.constant 0 : index
    %0 = vector.load %arg2[%c0, %c0_0] : memref<56x128xf32, #tpu.memory_space<vmem>>, vector<56x128xf32>
    %c0_1 = arith.constant 0 : index
    %c0_2 = arith.constant 0 : index
    %c0_3 = arith.constant 0 : index
    %1 = vector.load %arg1[%c0_1, %c0_2, %c0_3] : memref<1x37x512xf32, #tpu.memory_space<vmem>>, vector<1x37x512xf32>
    %2 = vector.shape_cast %1 : vector<1x37x512xf32> to vector<37x512xf32>
    %3 = vector.extract_strided_slice %0 {offsets = [0, 0], sizes = [5, 37], strides = [1, 1]} : vector<56x128xf32> to vector<5x37xf32>
    %cst = arith.constant dense<0.000000e+00> : vector<5x512xf32>
    %4 = tpu.matmul %3, %2, %cst {dimension_numbers = #tpu.dot_dimension_numbers<[1], [0], [0], [1], [0, 0, 1, 1], [], []>} : vector<5x37xf32>, vector<37x512xf32>, vector<5x512xf32> -> vector<5x512xf32>
    %cst_4 = arith.constant 0.000000e+00 : f32
    %5 = vector.broadcast %cst_4 : f32 to vector<5x512xf32>
    %6 = arith.maximumf %4, %5 : vector<5x512xf32>
    %7 = vector.extract_strided_slice %6 {offsets = [0, 0], sizes = [4, 512], strides = [1, 1]} : vector<5x512xf32> to vector<4x512xf32>
    %8 = vector.extract_strided_slice %0 {offsets = [5, 0], sizes = [16, 5], strides = [1, 1]} : vector<56x128xf32> to vector<16x5xf32>
    %cst_5 = arith.constant dense<0.000000e+00> : vector<16x512xf32>
    %9 = tpu.matmul %8, %6, %cst_5 {dimension_numbers = #tpu.dot_dimension_numbers<[1], [0], [0], [1], [0, 0, 1, 1], [], []>} : vector<16x5xf32>, vector<5x512xf32>, vector<16x512xf32> -> vector<16x512xf32>
    %cst_6 = arith.constant 0.000000e+00 : f32
    %10 = vector.broadcast %cst_6 : f32 to vector<16x512xf32>
    %11 = arith.maximumf %9, %10 : vector<16x512xf32>
    %12 = vector.extract_strided_slice %11 {offsets = [0, 0], sizes = [8, 512], strides = [1, 1]} : vector<16x512xf32> to vector<8x512xf32>
    %13 = vector.extract_strided_slice %11 {offsets = [8, 0], sizes = [4, 512], strides = [1, 1]} : vector<16x512xf32> to vector<4x512xf32>
    %14 = vector.extract_strided_slice %11 {offsets = [12, 0], sizes = [4, 512], strides = [1, 1]} : vector<16x512xf32> to vector<4x512xf32>
    %15 = vector.extract_strided_slice %0 {offsets = [21, 0], sizes = [4, 4], strides = [1, 1]} : vector<56x128xf32> to vector<4x4xf32>
    %16 = vector.extract_strided_slice %0 {offsets = [25, 0], sizes = [1, 4], strides = [1, 1]} : vector<56x128xf32> to vector<1x4xf32>
    %17 = vector.extract_strided_slice %0 {offsets = [26, 0], sizes = [8, 8], strides = [1, 1]} : vector<56x128xf32> to vector<8x8xf32>
    %18 = vector.extract_strided_slice %0 {offsets = [34, 0], sizes = [4, 4], strides = [1, 1]} : vector<56x128xf32> to vector<4x4xf32>
    %19 = vector.extract_strided_slice %0 {offsets = [38, 0], sizes = [1, 4], strides = [1, 1]} : vector<56x128xf32> to vector<1x4xf32>
    %20 = vector.extract_strided_slice %0 {offsets = [39, 0], sizes = [8, 8], strides = [1, 1]} : vector<56x128xf32> to vector<8x8xf32>
    %21 = vector.extract_strided_slice %12 {offsets = [0, 0], sizes = [8, 256], strides = [1, 1]} : vector<8x512xf32> to vector<8x256xf32>
    %22 = vector.extract_strided_slice %13 {offsets = [0, 0], sizes = [4, 256], strides = [1, 1]} : vector<4x512xf32> to vector<4x256xf32>
    %cst_7 = arith.constant dense<0.000000e+00> : vector<8x4xf32>
    %23 = tpu.matmul %21, %22, %cst_7 {dimension_numbers = #tpu.dot_dimension_numbers<[1], [1], [0], [0], [0, 0, 1, 0], [], []>} : vector<8x256xf32>, vector<4x256xf32>, vector<8x4xf32> -> vector<8x4xf32>
    %24 = vector.broadcast %16 : vector<1x4xf32> to vector<8x4xf32>
    %25 = arith.addf %23, %24 : vector<8x4xf32>
    %26 = vector.extract_strided_slice %23 {offsets = [0, 0], sizes = [8, 1], strides = [1, 1]} : vector<8x4xf32> to vector<8x1xf32>
    %27 = vector.extract_strided_slice %15 {offsets = [0, 0], sizes = [1, 4], strides = [1, 1]} : vector<4x4xf32> to vector<1x4xf32>
    %28 = vector.broadcast %26 : vector<8x1xf32> to vector<8x4xf32>
    %29 = vector.broadcast %27 : vector<1x4xf32> to vector<8x4xf32>
    %30 = arith.mulf %28, %29 : vector<8x4xf32>
    %31 = arith.addf %25, %30 : vector<8x4xf32>
    %32 = vector.extract_strided_slice %23 {offsets = [0, 1], sizes = [8, 1], strides = [1, 1]} : vector<8x4xf32> to vector<8x1xf32>
    %33 = vector.extract_strided_slice %15 {offsets = [1, 0], sizes = [1, 4], strides = [1, 1]} : vector<4x4xf32> to vector<1x4xf32>
    %34 = vector.broadcast %32 : vector<8x1xf32> to vector<8x4xf32>
    %35 = vector.broadcast %33 : vector<1x4xf32> to vector<8x4xf32>
    %36 = arith.mulf %34, %35 : vector<8x4xf32>
    %37 = arith.addf %31, %36 : vector<8x4xf32>
    %38 = vector.extract_strided_slice %23 {offsets = [0, 2], sizes = [8, 1], strides = [1, 1]} : vector<8x4xf32> to vector<8x1xf32>
    %39 = vector.extract_strided_slice %15 {offsets = [2, 0], sizes = [1, 4], strides = [1, 1]} : vector<4x4xf32> to vector<1x4xf32>
    %40 = vector.broadcast %38 : vector<8x1xf32> to vector<8x4xf32>
    %41 = vector.broadcast %39 : vector<1x4xf32> to vector<8x4xf32>
    %42 = arith.mulf %40, %41 : vector<8x4xf32>
    %43 = arith.addf %37, %42 : vector<8x4xf32>
    %44 = vector.extract_strided_slice %23 {offsets = [0, 3], sizes = [8, 1], strides = [1, 1]} : vector<8x4xf32> to vector<8x1xf32>
    %45 = vector.extract_strided_slice %15 {offsets = [3, 0], sizes = [1, 4], strides = [1, 1]} : vector<4x4xf32> to vector<1x4xf32>
    %46 = vector.broadcast %44 : vector<8x1xf32> to vector<8x4xf32>
    %47 = vector.broadcast %45 : vector<1x4xf32> to vector<8x4xf32>
    %48 = arith.mulf %46, %47 : vector<8x4xf32>
    %49 = arith.addf %43, %48 : vector<8x4xf32>
    %cst_8 = arith.constant 0.000000e+00 : f32
    %50 = vector.broadcast %cst_8 : f32 to vector<8x4xf32>
    %51 = arith.cmpf oge, %49, %50 : vector<8x4xf32>
    %cst_9 = arith.constant 2.000000e-01 : f32
    %52 = vector.broadcast %cst_9 : f32 to vector<8x4xf32>
    %53 = arith.mulf %52, %49 : vector<8x4xf32>
    %54 = arith.select %51, %49, %53 : vector<8x4xi1>, vector<8x4xf32>
    %cst_10 = arith.constant 0.000000e+00 : f32
    %55 = vector.broadcast %cst_10 : f32 to vector<8x4xf32>
    %56 = vector.extract_strided_slice %17 {offsets = [0, 0], sizes = [8, 1], strides = [1, 1]} : vector<8x8xf32> to vector<8x1xf32>
    %57 = vector.extract_strided_slice %54 {offsets = [0, 0], sizes = [1, 4], strides = [1, 1]} : vector<8x4xf32> to vector<1x4xf32>
    %58 = vector.broadcast %56 : vector<8x1xf32> to vector<8x4xf32>
    %59 = vector.broadcast %57 : vector<1x4xf32> to vector<8x4xf32>
    %60 = arith.mulf %58, %59 : vector<8x4xf32>
    %61 = arith.addf %55, %60 : vector<8x4xf32>
    %62 = vector.extract_strided_slice %17 {offsets = [0, 1], sizes = [8, 1], strides = [1, 1]} : vector<8x8xf32> to vector<8x1xf32>
    %63 = vector.extract_strided_slice %54 {offsets = [1, 0], sizes = [1, 4], strides = [1, 1]} : vector<8x4xf32> to vector<1x4xf32>
    %64 = vector.broadcast %62 : vector<8x1xf32> to vector<8x4xf32>
    %65 = vector.broadcast %63 : vector<1x4xf32> to vector<8x4xf32>
    %66 = arith.mulf %64, %65 : vector<8x4xf32>
    %67 = arith.addf %61, %66 : vector<8x4xf32>
    %68 = vector.extract_strided_slice %17 {offsets = [0, 2], sizes = [8, 1], strides = [1, 1]} : vector<8x8xf32> to vector<8x1xf32>
    %69 = vector.extract_strided_slice %54 {offsets = [2, 0], sizes = [1, 4], strides = [1, 1]} : vector<8x4xf32> to vector<1x4xf32>
    %70 = vector.broadcast %68 : vector<8x1xf32> to vector<8x4xf32>
    %71 = vector.broadcast %69 : vector<1x4xf32> to vector<8x4xf32>
    %72 = arith.mulf %70, %71 : vector<8x4xf32>
    %73 = arith.addf %67, %72 : vector<8x4xf32>
    %74 = vector.extract_strided_slice %17 {offsets = [0, 3], sizes = [8, 1], strides = [1, 1]} : vector<8x8xf32> to vector<8x1xf32>
    %75 = vector.extract_strided_slice %54 {offsets = [3, 0], sizes = [1, 4], strides = [1, 1]} : vector<8x4xf32> to vector<1x4xf32>
    %76 = vector.broadcast %74 : vector<8x1xf32> to vector<8x4xf32>
    %77 = vector.broadcast %75 : vector<1x4xf32> to vector<8x4xf32>
    %78 = arith.mulf %76, %77 : vector<8x4xf32>
    %79 = arith.addf %73, %78 : vector<8x4xf32>
    %80 = vector.extract_strided_slice %17 {offsets = [0, 4], sizes = [8, 1], strides = [1, 1]} : vector<8x8xf32> to vector<8x1xf32>
    %81 = vector.extract_strided_slice %54 {offsets = [4, 0], sizes = [1, 4], strides = [1, 1]} : vector<8x4xf32> to vector<1x4xf32>
    %82 = vector.broadcast %80 : vector<8x1xf32> to vector<8x4xf32>
    %83 = vector.broadcast %81 : vector<1x4xf32> to vector<8x4xf32>
    %84 = arith.mulf %82, %83 : vector<8x4xf32>
    %85 = arith.addf %79, %84 : vector<8x4xf32>
    %86 = vector.extract_strided_slice %17 {offsets = [0, 5], sizes = [8, 1], strides = [1, 1]} : vector<8x8xf32> to vector<8x1xf32>
    %87 = vector.extract_strided_slice %54 {offsets = [5, 0], sizes = [1, 4], strides = [1, 1]} : vector<8x4xf32> to vector<1x4xf32>
    %88 = vector.broadcast %86 : vector<8x1xf32> to vector<8x4xf32>
    %89 = vector.broadcast %87 : vector<1x4xf32> to vector<8x4xf32>
    %90 = arith.mulf %88, %89 : vector<8x4xf32>
    %91 = arith.addf %85, %90 : vector<8x4xf32>
    %92 = vector.extract_strided_slice %17 {offsets = [0, 6], sizes = [8, 1], strides = [1, 1]} : vector<8x8xf32> to vector<8x1xf32>
    %93 = vector.extract_strided_slice %54 {offsets = [6, 0], sizes = [1, 4], strides = [1, 1]} : vector<8x4xf32> to vector<1x4xf32>
    %94 = vector.broadcast %92 : vector<8x1xf32> to vector<8x4xf32>
    %95 = vector.broadcast %93 : vector<1x4xf32> to vector<8x4xf32>
    %96 = arith.mulf %94, %95 : vector<8x4xf32>
    %97 = arith.addf %91, %96 : vector<8x4xf32>
    %98 = vector.extract_strided_slice %17 {offsets = [0, 7], sizes = [8, 1], strides = [1, 1]} : vector<8x8xf32> to vector<8x1xf32>
    %99 = vector.extract_strided_slice %54 {offsets = [7, 0], sizes = [1, 4], strides = [1, 1]} : vector<8x4xf32> to vector<1x4xf32>
    %100 = vector.broadcast %98 : vector<8x1xf32> to vector<8x4xf32>
    %101 = vector.broadcast %99 : vector<1x4xf32> to vector<8x4xf32>
    %102 = arith.mulf %100, %101 : vector<8x4xf32>
    %103 = arith.addf %97, %102 : vector<8x4xf32>
    %104 = vector.broadcast %19 : vector<1x4xf32> to vector<8x4xf32>
    %105 = arith.addf %103, %104 : vector<8x4xf32>
    %106 = vector.extract_strided_slice %103 {offsets = [0, 0], sizes = [8, 1], strides = [1, 1]} : vector<8x4xf32> to vector<8x1xf32>
    %107 = vector.extract_strided_slice %18 {offsets = [0, 0], sizes = [1, 4], strides = [1, 1]} : vector<4x4xf32> to vector<1x4xf32>
    %108 = vector.broadcast %106 : vector<8x1xf32> to vector<8x4xf32>
    %109 = vector.broadcast %107 : vector<1x4xf32> to vector<8x4xf32>
    %110 = arith.mulf %108, %109 : vector<8x4xf32>
    %111 = arith.addf %105, %110 : vector<8x4xf32>
    %112 = vector.extract_strided_slice %103 {offsets = [0, 1], sizes = [8, 1], strides = [1, 1]} : vector<8x4xf32> to vector<8x1xf32>
    %113 = vector.extract_strided_slice %18 {offsets = [1, 0], sizes = [1, 4], strides = [1, 1]} : vector<4x4xf32> to vector<1x4xf32>
    %114 = vector.broadcast %112 : vector<8x1xf32> to vector<8x4xf32>
    %115 = vector.broadcast %113 : vector<1x4xf32> to vector<8x4xf32>
    %116 = arith.mulf %114, %115 : vector<8x4xf32>
    %117 = arith.addf %111, %116 : vector<8x4xf32>
    %118 = vector.extract_strided_slice %103 {offsets = [0, 2], sizes = [8, 1], strides = [1, 1]} : vector<8x4xf32> to vector<8x1xf32>
    %119 = vector.extract_strided_slice %18 {offsets = [2, 0], sizes = [1, 4], strides = [1, 1]} : vector<4x4xf32> to vector<1x4xf32>
    %120 = vector.broadcast %118 : vector<8x1xf32> to vector<8x4xf32>
    %121 = vector.broadcast %119 : vector<1x4xf32> to vector<8x4xf32>
    %122 = arith.mulf %120, %121 : vector<8x4xf32>
    %123 = arith.addf %117, %122 : vector<8x4xf32>
    %124 = vector.extract_strided_slice %103 {offsets = [0, 3], sizes = [8, 1], strides = [1, 1]} : vector<8x4xf32> to vector<8x1xf32>
    %125 = vector.extract_strided_slice %18 {offsets = [3, 0], sizes = [1, 4], strides = [1, 1]} : vector<4x4xf32> to vector<1x4xf32>
    %126 = vector.broadcast %124 : vector<8x1xf32> to vector<8x4xf32>
    %127 = vector.broadcast %125 : vector<1x4xf32> to vector<8x4xf32>
    %128 = arith.mulf %126, %127 : vector<8x4xf32>
    %129 = arith.addf %123, %128 : vector<8x4xf32>
    %cst_11 = arith.constant 0.000000e+00 : f32
    %130 = vector.broadcast %cst_11 : f32 to vector<8x4xf32>
    %131 = arith.cmpf oge, %129, %130 : vector<8x4xf32>
    %cst_12 = arith.constant 2.000000e-01 : f32
    %132 = vector.broadcast %cst_12 : f32 to vector<8x4xf32>
    %133 = arith.mulf %132, %129 : vector<8x4xf32>
    %134 = arith.select %131, %129, %133 : vector<8x4xi1>, vector<8x4xf32>
    %cst_13 = arith.constant 0.000000e+00 : f32
    %135 = vector.broadcast %cst_13 : f32 to vector<8x4xf32>
    %136 = vector.extract_strided_slice %20 {offsets = [0, 0], sizes = [8, 1], strides = [1, 1]} : vector<8x8xf32> to vector<8x1xf32>
    %137 = vector.extract_strided_slice %134 {offsets = [0, 0], sizes = [1, 4], strides = [1, 1]} : vector<8x4xf32> to vector<1x4xf32>
    %138 = vector.broadcast %136 : vector<8x1xf32> to vector<8x4xf32>
    %139 = vector.broadcast %137 : vector<1x4xf32> to vector<8x4xf32>
    %140 = arith.mulf %138, %139 : vector<8x4xf32>
    %141 = arith.addf %135, %140 : vector<8x4xf32>
    %142 = vector.extract_strided_slice %20 {offsets = [0, 1], sizes = [8, 1], strides = [1, 1]} : vector<8x8xf32> to vector<8x1xf32>
    %143 = vector.extract_strided_slice %134 {offsets = [1, 0], sizes = [1, 4], strides = [1, 1]} : vector<8x4xf32> to vector<1x4xf32>
    %144 = vector.broadcast %142 : vector<8x1xf32> to vector<8x4xf32>
    %145 = vector.broadcast %143 : vector<1x4xf32> to vector<8x4xf32>
    %146 = arith.mulf %144, %145 : vector<8x4xf32>
    %147 = arith.addf %141, %146 : vector<8x4xf32>
    %148 = vector.extract_strided_slice %20 {offsets = [0, 2], sizes = [8, 1], strides = [1, 1]} : vector<8x8xf32> to vector<8x1xf32>
    %149 = vector.extract_strided_slice %134 {offsets = [2, 0], sizes = [1, 4], strides = [1, 1]} : vector<8x4xf32> to vector<1x4xf32>
    %150 = vector.broadcast %148 : vector<8x1xf32> to vector<8x4xf32>
    %151 = vector.broadcast %149 : vector<1x4xf32> to vector<8x4xf32>
    %152 = arith.mulf %150, %151 : vector<8x4xf32>
    %153 = arith.addf %147, %152 : vector<8x4xf32>
    %154 = vector.extract_strided_slice %20 {offsets = [0, 3], sizes = [8, 1], strides = [1, 1]} : vector<8x8xf32> to vector<8x1xf32>
    %155 = vector.extract_strided_slice %134 {offsets = [3, 0], sizes = [1, 4], strides = [1, 1]} : vector<8x4xf32> to vector<1x4xf32>
    %156 = vector.broadcast %154 : vector<8x1xf32> to vector<8x4xf32>
    %157 = vector.broadcast %155 : vector<1x4xf32> to vector<8x4xf32>
    %158 = arith.mulf %156, %157 : vector<8x4xf32>
    %159 = arith.addf %153, %158 : vector<8x4xf32>
    %160 = vector.extract_strided_slice %20 {offsets = [0, 4], sizes = [8, 1], strides = [1, 1]} : vector<8x8xf32> to vector<8x1xf32>
    %161 = vector.extract_strided_slice %134 {offsets = [4, 0], sizes = [1, 4], strides = [1, 1]} : vector<8x4xf32> to vector<1x4xf32>
    %162 = vector.broadcast %160 : vector<8x1xf32> to vector<8x4xf32>
    %163 = vector.broadcast %161 : vector<1x4xf32> to vector<8x4xf32>
    %164 = arith.mulf %162, %163 : vector<8x4xf32>
    %165 = arith.addf %159, %164 : vector<8x4xf32>
    %166 = vector.extract_strided_slice %20 {offsets = [0, 5], sizes = [8, 1], strides = [1, 1]} : vector<8x8xf32> to vector<8x1xf32>
    %167 = vector.extract_strided_slice %134 {offsets = [5, 0], sizes = [1, 4], strides = [1, 1]} : vector<8x4xf32> to vector<1x4xf32>
    %168 = vector.broadcast %166 : vector<8x1xf32> to vector<8x4xf32>
    %169 = vector.broadcast %167 : vector<1x4xf32> to vector<8x4xf32>
    %170 = arith.mulf %168, %169 : vector<8x4xf32>
    %171 = arith.addf %165, %170 : vector<8x4xf32>
    %172 = vector.extract_strided_slice %20 {offsets = [0, 6], sizes = [8, 1], strides = [1, 1]} : vector<8x8xf32> to vector<8x1xf32>
    %173 = vector.extract_strided_slice %134 {offsets = [6, 0], sizes = [1, 4], strides = [1, 1]} : vector<8x4xf32> to vector<1x4xf32>
    %174 = vector.broadcast %172 : vector<8x1xf32> to vector<8x4xf32>
    %175 = vector.broadcast %173 : vector<1x4xf32> to vector<8x4xf32>
    %176 = arith.mulf %174, %175 : vector<8x4xf32>
    %177 = arith.addf %171, %176 : vector<8x4xf32>
    %178 = vector.extract_strided_slice %20 {offsets = [0, 7], sizes = [8, 1], strides = [1, 1]} : vector<8x8xf32> to vector<8x1xf32>
    %179 = vector.extract_strided_slice %134 {offsets = [7, 0], sizes = [1, 4], strides = [1, 1]} : vector<8x4xf32> to vector<1x4xf32>
    %180 = vector.broadcast %178 : vector<8x1xf32> to vector<8x4xf32>
    %181 = vector.broadcast %179 : vector<1x4xf32> to vector<8x4xf32>
    %182 = arith.mulf %180, %181 : vector<8x4xf32>
    %183 = arith.addf %177, %182 : vector<8x4xf32>
    %184 = vector.extract_strided_slice %14 {offsets = [0, 0], sizes = [4, 256], strides = [1, 1]} : vector<4x512xf32> to vector<4x256xf32>
    %cst_14 = arith.constant dense<0.000000e+00> : vector<8x256xf32>
    %185 = tpu.matmul %183, %184, %cst_14 {dimension_numbers = #tpu.dot_dimension_numbers<[1], [0], [0], [1], [0, 0, 1, 1], [], []>} : vector<8x4xf32>, vector<4x256xf32>, vector<8x256xf32> -> vector<8x256xf32>
    %186 = vector.extract_strided_slice %12 {offsets = [0, 256], sizes = [8, 256], strides = [1, 1]} : vector<8x512xf32> to vector<8x256xf32>
    %187 = vector.extract_strided_slice %13 {offsets = [0, 256], sizes = [4, 256], strides = [1, 1]} : vector<4x512xf32> to vector<4x256xf32>
    %cst_15 = arith.constant dense<0.000000e+00> : vector<8x4xf32>
    %188 = tpu.matmul %186, %187, %cst_15 {dimension_numbers = #tpu.dot_dimension_numbers<[1], [1], [0], [0], [0, 0, 1, 0], [], []>} : vector<8x256xf32>, vector<4x256xf32>, vector<8x4xf32> -> vector<8x4xf32>
    %189 = vector.broadcast %16 : vector<1x4xf32> to vector<8x4xf32>
    %190 = arith.addf %188, %189 : vector<8x4xf32>
    %191 = vector.extract_strided_slice %188 {offsets = [0, 0], sizes = [8, 1], strides = [1, 1]} : vector<8x4xf32> to vector<8x1xf32>
    %192 = vector.extract_strided_slice %15 {offsets = [0, 0], sizes = [1, 4], strides = [1, 1]} : vector<4x4xf32> to vector<1x4xf32>
    %193 = vector.broadcast %191 : vector<8x1xf32> to vector<8x4xf32>
    %194 = vector.broadcast %192 : vector<1x4xf32> to vector<8x4xf32>
    %195 = arith.mulf %193, %194 : vector<8x4xf32>
    %196 = arith.addf %190, %195 : vector<8x4xf32>
    %197 = vector.extract_strided_slice %188 {offsets = [0, 1], sizes = [8, 1], strides = [1, 1]} : vector<8x4xf32> to vector<8x1xf32>
    %198 = vector.extract_strided_slice %15 {offsets = [1, 0], sizes = [1, 4], strides = [1, 1]} : vector<4x4xf32> to vector<1x4xf32>
    %199 = vector.broadcast %197 : vector<8x1xf32> to vector<8x4xf32>
    %200 = vector.broadcast %198 : vector<1x4xf32> to vector<8x4xf32>
    %201 = arith.mulf %199, %200 : vector<8x4xf32>
    %202 = arith.addf %196, %201 : vector<8x4xf32>
    %203 = vector.extract_strided_slice %188 {offsets = [0, 2], sizes = [8, 1], strides = [1, 1]} : vector<8x4xf32> to vector<8x1xf32>
    %204 = vector.extract_strided_slice %15 {offsets = [2, 0], sizes = [1, 4], strides = [1, 1]} : vector<4x4xf32> to vector<1x4xf32>
    %205 = vector.broadcast %203 : vector<8x1xf32> to vector<8x4xf32>
    %206 = vector.broadcast %204 : vector<1x4xf32> to vector<8x4xf32>
    %207 = arith.mulf %205, %206 : vector<8x4xf32>
    %208 = arith.addf %202, %207 : vector<8x4xf32>
    %209 = vector.extract_strided_slice %188 {offsets = [0, 3], sizes = [8, 1], strides = [1, 1]} : vector<8x4xf32> to vector<8x1xf32>
    %210 = vector.extract_strided_slice %15 {offsets = [3, 0], sizes = [1, 4], strides = [1, 1]} : vector<4x4xf32> to vector<1x4xf32>
    %211 = vector.broadcast %209 : vector<8x1xf32> to vector<8x4xf32>
    %212 = vector.broadcast %210 : vector<1x4xf32> to vector<8x4xf32>
    %213 = arith.mulf %211, %212 : vector<8x4xf32>
    %214 = arith.addf %208, %213 : vector<8x4xf32>
    %cst_16 = arith.constant 0.000000e+00 : f32
    %215 = vector.broadcast %cst_16 : f32 to vector<8x4xf32>
    %216 = arith.cmpf oge, %214, %215 : vector<8x4xf32>
    %cst_17 = arith.constant 2.000000e-01 : f32
    %217 = vector.broadcast %cst_17 : f32 to vector<8x4xf32>
    %218 = arith.mulf %217, %214 : vector<8x4xf32>
    %219 = arith.select %216, %214, %218 : vector<8x4xi1>, vector<8x4xf32>
    %cst_18 = arith.constant 0.000000e+00 : f32
    %220 = vector.broadcast %cst_18 : f32 to vector<8x4xf32>
    %221 = vector.extract_strided_slice %17 {offsets = [0, 0], sizes = [8, 1], strides = [1, 1]} : vector<8x8xf32> to vector<8x1xf32>
    %222 = vector.extract_strided_slice %219 {offsets = [0, 0], sizes = [1, 4], strides = [1, 1]} : vector<8x4xf32> to vector<1x4xf32>
    %223 = vector.broadcast %221 : vector<8x1xf32> to vector<8x4xf32>
    %224 = vector.broadcast %222 : vector<1x4xf32> to vector<8x4xf32>
    %225 = arith.mulf %223, %224 : vector<8x4xf32>
    %226 = arith.addf %220, %225 : vector<8x4xf32>
    %227 = vector.extract_strided_slice %17 {offsets = [0, 1], sizes = [8, 1], strides = [1, 1]} : vector<8x8xf32> to vector<8x1xf32>
    %228 = vector.extract_strided_slice %219 {offsets = [1, 0], sizes = [1, 4], strides = [1, 1]} : vector<8x4xf32> to vector<1x4xf32>
    %229 = vector.broadcast %227 : vector<8x1xf32> to vector<8x4xf32>
    %230 = vector.broadcast %228 : vector<1x4xf32> to vector<8x4xf32>
    %231 = arith.mulf %229, %230 : vector<8x4xf32>
    %232 = arith.addf %226, %231 : vector<8x4xf32>
    %233 = vector.extract_strided_slice %17 {offsets = [0, 2], sizes = [8, 1], strides = [1, 1]} : vector<8x8xf32> to vector<8x1xf32>
    %234 = vector.extract_strided_slice %219 {offsets = [2, 0], sizes = [1, 4], strides = [1, 1]} : vector<8x4xf32> to vector<1x4xf32>
    %235 = vector.broadcast %233 : vector<8x1xf32> to vector<8x4xf32>
    %236 = vector.broadcast %234 : vector<1x4xf32> to vector<8x4xf32>
    %237 = arith.mulf %235, %236 : vector<8x4xf32>
    %238 = arith.addf %232, %237 : vector<8x4xf32>
    %239 = vector.extract_strided_slice %17 {offsets = [0, 3], sizes = [8, 1], strides = [1, 1]} : vector<8x8xf32> to vector<8x1xf32>
    %240 = vector.extract_strided_slice %219 {offsets = [3, 0], sizes = [1, 4], strides = [1, 1]} : vector<8x4xf32> to vector<1x4xf32>
    %241 = vector.broadcast %239 : vector<8x1xf32> to vector<8x4xf32>
    %242 = vector.broadcast %240 : vector<1x4xf32> to vector<8x4xf32>
    %243 = arith.mulf %241, %242 : vector<8x4xf32>
    %244 = arith.addf %238, %243 : vector<8x4xf32>
    %245 = vector.extract_strided_slice %17 {offsets = [0, 4], sizes = [8, 1], strides = [1, 1]} : vector<8x8xf32> to vector<8x1xf32>
    %246 = vector.extract_strided_slice %219 {offsets = [4, 0], sizes = [1, 4], strides = [1, 1]} : vector<8x4xf32> to vector<1x4xf32>
    %247 = vector.broadcast %245 : vector<8x1xf32> to vector<8x4xf32>
    %248 = vector.broadcast %246 : vector<1x4xf32> to vector<8x4xf32>
    %249 = arith.mulf %247, %248 : vector<8x4xf32>
    %250 = arith.addf %244, %249 : vector<8x4xf32>
    %251 = vector.extract_strided_slice %17 {offsets = [0, 5], sizes = [8, 1], strides = [1, 1]} : vector<8x8xf32> to vector<8x1xf32>
    %252 = vector.extract_strided_slice %219 {offsets = [5, 0], sizes = [1, 4], strides = [1, 1]} : vector<8x4xf32> to vector<1x4xf32>
    %253 = vector.broadcast %251 : vector<8x1xf32> to vector<8x4xf32>
    %254 = vector.broadcast %252 : vector<1x4xf32> to vector<8x4xf32>
    %255 = arith.mulf %253, %254 : vector<8x4xf32>
    %256 = arith.addf %250, %255 : vector<8x4xf32>
    %257 = vector.extract_strided_slice %17 {offsets = [0, 6], sizes = [8, 1], strides = [1, 1]} : vector<8x8xf32> to vector<8x1xf32>
    %258 = vector.extract_strided_slice %219 {offsets = [6, 0], sizes = [1, 4], strides = [1, 1]} : vector<8x4xf32> to vector<1x4xf32>
    %259 = vector.broadcast %257 : vector<8x1xf32> to vector<8x4xf32>
    %260 = vector.broadcast %258 : vector<1x4xf32> to vector<8x4xf32>
    %261 = arith.mulf %259, %260 : vector<8x4xf32>
    %262 = arith.addf %256, %261 : vector<8x4xf32>
    %263 = vector.extract_strided_slice %17 {offsets = [0, 7], sizes = [8, 1], strides = [1, 1]} : vector<8x8xf32> to vector<8x1xf32>
    %264 = vector.extract_strided_slice %219 {offsets = [7, 0], sizes = [1, 4], strides = [1, 1]} : vector<8x4xf32> to vector<1x4xf32>
    %265 = vector.broadcast %263 : vector<8x1xf32> to vector<8x4xf32>
    %266 = vector.broadcast %264 : vector<1x4xf32> to vector<8x4xf32>
    %267 = arith.mulf %265, %266 : vector<8x4xf32>
    %268 = arith.addf %262, %267 : vector<8x4xf32>
    %269 = vector.broadcast %19 : vector<1x4xf32> to vector<8x4xf32>
    %270 = arith.addf %268, %269 : vector<8x4xf32>
    %271 = vector.extract_strided_slice %268 {offsets = [0, 0], sizes = [8, 1], strides = [1, 1]} : vector<8x4xf32> to vector<8x1xf32>
    %272 = vector.extract_strided_slice %18 {offsets = [0, 0], sizes = [1, 4], strides = [1, 1]} : vector<4x4xf32> to vector<1x4xf32>
    %273 = vector.broadcast %271 : vector<8x1xf32> to vector<8x4xf32>
    %274 = vector.broadcast %272 : vector<1x4xf32> to vector<8x4xf32>
    %275 = arith.mulf %273, %274 : vector<8x4xf32>
    %276 = arith.addf %270, %275 : vector<8x4xf32>
    %277 = vector.extract_strided_slice %268 {offsets = [0, 1], sizes = [8, 1], strides = [1, 1]} : vector<8x4xf32> to vector<8x1xf32>
    %278 = vector.extract_strided_slice %18 {offsets = [1, 0], sizes = [1, 4], strides = [1, 1]} : vector<4x4xf32> to vector<1x4xf32>
    %279 = vector.broadcast %277 : vector<8x1xf32> to vector<8x4xf32>
    %280 = vector.broadcast %278 : vector<1x4xf32> to vector<8x4xf32>
    %281 = arith.mulf %279, %280 : vector<8x4xf32>
    %282 = arith.addf %276, %281 : vector<8x4xf32>
    %283 = vector.extract_strided_slice %268 {offsets = [0, 2], sizes = [8, 1], strides = [1, 1]} : vector<8x4xf32> to vector<8x1xf32>
    %284 = vector.extract_strided_slice %18 {offsets = [2, 0], sizes = [1, 4], strides = [1, 1]} : vector<4x4xf32> to vector<1x4xf32>
    %285 = vector.broadcast %283 : vector<8x1xf32> to vector<8x4xf32>
    %286 = vector.broadcast %284 : vector<1x4xf32> to vector<8x4xf32>
    %287 = arith.mulf %285, %286 : vector<8x4xf32>
    %288 = arith.addf %282, %287 : vector<8x4xf32>
    %289 = vector.extract_strided_slice %268 {offsets = [0, 3], sizes = [8, 1], strides = [1, 1]} : vector<8x4xf32> to vector<8x1xf32>
    %290 = vector.extract_strided_slice %18 {offsets = [3, 0], sizes = [1, 4], strides = [1, 1]} : vector<4x4xf32> to vector<1x4xf32>
    %291 = vector.broadcast %289 : vector<8x1xf32> to vector<8x4xf32>
    %292 = vector.broadcast %290 : vector<1x4xf32> to vector<8x4xf32>
    %293 = arith.mulf %291, %292 : vector<8x4xf32>
    %294 = arith.addf %288, %293 : vector<8x4xf32>
    %cst_19 = arith.constant 0.000000e+00 : f32
    %295 = vector.broadcast %cst_19 : f32 to vector<8x4xf32>
    %296 = arith.cmpf oge, %294, %295 : vector<8x4xf32>
    %cst_20 = arith.constant 2.000000e-01 : f32
    %297 = vector.broadcast %cst_20 : f32 to vector<8x4xf32>
    %298 = arith.mulf %297, %294 : vector<8x4xf32>
    %299 = arith.select %296, %294, %298 : vector<8x4xi1>, vector<8x4xf32>
    %cst_21 = arith.constant 0.000000e+00 : f32
    %300 = vector.broadcast %cst_21 : f32 to vector<8x4xf32>
    %301 = vector.extract_strided_slice %20 {offsets = [0, 0], sizes = [8, 1], strides = [1, 1]} : vector<8x8xf32> to vector<8x1xf32>
    %302 = vector.extract_strided_slice %299 {offsets = [0, 0], sizes = [1, 4], strides = [1, 1]} : vector<8x4xf32> to vector<1x4xf32>
    %303 = vector.broadcast %301 : vector<8x1xf32> to vector<8x4xf32>
    %304 = vector.broadcast %302 : vector<1x4xf32> to vector<8x4xf32>
    %305 = arith.mulf %303, %304 : vector<8x4xf32>
    %306 = arith.addf %300, %305 : vector<8x4xf32>
    %307 = vector.extract_strided_slice %20 {offsets = [0, 1], sizes = [8, 1], strides = [1, 1]} : vector<8x8xf32> to vector<8x1xf32>
    %308 = vector.extract_strided_slice %299 {offsets = [1, 0], sizes = [1, 4], strides = [1, 1]} : vector<8x4xf32> to vector<1x4xf32>
    %309 = vector.broadcast %307 : vector<8x1xf32> to vector<8x4xf32>
    %310 = vector.broadcast %308 : vector<1x4xf32> to vector<8x4xf32>
    %311 = arith.mulf %309, %310 : vector<8x4xf32>
    %312 = arith.addf %306, %311 : vector<8x4xf32>
    %313 = vector.extract_strided_slice %20 {offsets = [0, 2], sizes = [8, 1], strides = [1, 1]} : vector<8x8xf32> to vector<8x1xf32>
    %314 = vector.extract_strided_slice %299 {offsets = [2, 0], sizes = [1, 4], strides = [1, 1]} : vector<8x4xf32> to vector<1x4xf32>
    %315 = vector.broadcast %313 : vector<8x1xf32> to vector<8x4xf32>
    %316 = vector.broadcast %314 : vector<1x4xf32> to vector<8x4xf32>
    %317 = arith.mulf %315, %316 : vector<8x4xf32>
    %318 = arith.addf %312, %317 : vector<8x4xf32>
    %319 = vector.extract_strided_slice %20 {offsets = [0, 3], sizes = [8, 1], strides = [1, 1]} : vector<8x8xf32> to vector<8x1xf32>
    %320 = vector.extract_strided_slice %299 {offsets = [3, 0], sizes = [1, 4], strides = [1, 1]} : vector<8x4xf32> to vector<1x4xf32>
    %321 = vector.broadcast %319 : vector<8x1xf32> to vector<8x4xf32>
    %322 = vector.broadcast %320 : vector<1x4xf32> to vector<8x4xf32>
    %323 = arith.mulf %321, %322 : vector<8x4xf32>
    %324 = arith.addf %318, %323 : vector<8x4xf32>
    %325 = vector.extract_strided_slice %20 {offsets = [0, 4], sizes = [8, 1], strides = [1, 1]} : vector<8x8xf32> to vector<8x1xf32>
    %326 = vector.extract_strided_slice %299 {offsets = [4, 0], sizes = [1, 4], strides = [1, 1]} : vector<8x4xf32> to vector<1x4xf32>
    %327 = vector.broadcast %325 : vector<8x1xf32> to vector<8x4xf32>
    %328 = vector.broadcast %326 : vector<1x4xf32> to vector<8x4xf32>
    %329 = arith.mulf %327, %328 : vector<8x4xf32>
    %330 = arith.addf %324, %329 : vector<8x4xf32>
    %331 = vector.extract_strided_slice %20 {offsets = [0, 5], sizes = [8, 1], strides = [1, 1]} : vector<8x8xf32> to vector<8x1xf32>
    %332 = vector.extract_strided_slice %299 {offsets = [5, 0], sizes = [1, 4], strides = [1, 1]} : vector<8x4xf32> to vector<1x4xf32>
    %333 = vector.broadcast %331 : vector<8x1xf32> to vector<8x4xf32>
    %334 = vector.broadcast %332 : vector<1x4xf32> to vector<8x4xf32>
    %335 = arith.mulf %333, %334 : vector<8x4xf32>
    %336 = arith.addf %330, %335 : vector<8x4xf32>
    %337 = vector.extract_strided_slice %20 {offsets = [0, 6], sizes = [8, 1], strides = [1, 1]} : vector<8x8xf32> to vector<8x1xf32>
    %338 = vector.extract_strided_slice %299 {offsets = [6, 0], sizes = [1, 4], strides = [1, 1]} : vector<8x4xf32> to vector<1x4xf32>
    %339 = vector.broadcast %337 : vector<8x1xf32> to vector<8x4xf32>
    %340 = vector.broadcast %338 : vector<1x4xf32> to vector<8x4xf32>
    %341 = arith.mulf %339, %340 : vector<8x4xf32>
    %342 = arith.addf %336, %341 : vector<8x4xf32>
    %343 = vector.extract_strided_slice %20 {offsets = [0, 7], sizes = [8, 1], strides = [1, 1]} : vector<8x8xf32> to vector<8x1xf32>
    %344 = vector.extract_strided_slice %299 {offsets = [7, 0], sizes = [1, 4], strides = [1, 1]} : vector<8x4xf32> to vector<1x4xf32>
    %345 = vector.broadcast %343 : vector<8x1xf32> to vector<8x4xf32>
    %346 = vector.broadcast %344 : vector<1x4xf32> to vector<8x4xf32>
    %347 = arith.mulf %345, %346 : vector<8x4xf32>
    %348 = arith.addf %342, %347 : vector<8x4xf32>
    %349 = vector.extract_strided_slice %14 {offsets = [0, 256], sizes = [4, 256], strides = [1, 1]} : vector<4x512xf32> to vector<4x256xf32>
    %cst_22 = arith.constant dense<0.000000e+00> : vector<8x256xf32>
    %350 = tpu.matmul %348, %349, %cst_22 {dimension_numbers = #tpu.dot_dimension_numbers<[1], [0], [0], [1], [0, 0, 1, 1], [], []>} : vector<8x4xf32>, vector<4x256xf32>, vector<8x256xf32> -> vector<8x256xf32>
    %351 = tpu.concatenate %185, %350 in 1 : vector<8x256xf32>, vector<8x256xf32> -> vector<8x512xf32>
    %352 = vector.extract_strided_slice %0 {offsets = [47, 0], sizes = [4, 8], strides = [1, 1]} : vector<56x128xf32> to vector<4x8xf32>
    %cst_23 = arith.constant dense<0.000000e+00> : vector<4x512xf32>
    %353 = tpu.matmul %352, %351, %cst_23 {dimension_numbers = #tpu.dot_dimension_numbers<[1], [0], [0], [1], [0, 0, 1, 1], [], []>} : vector<4x8xf32>, vector<8x512xf32>, vector<4x512xf32> -> vector<4x512xf32>
    %354 = arith.addf %7, %353 : vector<4x512xf32>
    %c0_24 = arith.constant 0 : index
    %c0_25 = arith.constant 0 : index
    %c0_26 = arith.constant 0 : index
    %355 = vector.load %arg3[%c0_24, %c0_25, %c0_26] : memref<1x4x512xf32, #tpu.memory_space<vmem>>, vector<1x4x512xf32>
    %356 = vector.shape_cast %355 : vector<1x4x512xf32> to vector<4x512xf32>
    %357 = vector.shape_cast %354 : vector<4x512xf32> to vector<1x4x512xf32>
    tpu.vector_store %arg3[%c0_24, %c0_25, %c0_26], %357 {strides = array<i32>} : memref<1x4x512xf32, #tpu.memory_space<vmem>>, vector<1x4x512xf32>,
    return
  }
  func.func @transform_0(%arg0: i32) -> (i32, i32, i32) {
    %c0_i32 = arith.constant 0 : i32
    %c0_i32_0 = arith.constant 0 : i32
    %c0_i32_1 = arith.constant 0 : i32
    return %arg0, %c0_i32, %c0_i32_0 : i32, i32, i32
  }
  func.func @transform_1(%arg0: i32) -> (i32, i32) {
    %c0_i32 = arith.constant 0 : i32
    %c0_i32_0 = arith.constant 0 : i32
    %c0_i32_1 = arith.constant 0 : i32
    return %c0_i32, %c0_i32_0 : i32, i32
  }
  func.func @transform_2(%arg0: i32) -> (i32, i32, i32) {
    %c0_i32 = arith.constant 0 : i32
    %c0_i32_0 = arith.constant 0 : i32
    %c0_i32_1 = arith.constant 0 : i32
    return %arg0, %c0_i32, %c0_i32_0 : i32, i32, i32
  }
}

</mosaic_0001>

<bundles_post_ra>
// kernel: mgr_forward.1
= control target key start
LH: loop header
LB: loop body
LE: loop exit
PB: predicated region body
PF: predicated region fallthrough
CT: control target
= control target key end

     0   :  { %v1533_v3 = vmov 0.0   ;;  %vm42_vm0 = vcmask 1044480   ;;  %vm38_vm1 = vcmask 302080   ;;  %vm203_vm2 = vcmask 1042432   ;;  %s2060_s0 = inlined_call_operand.vmem [shape: f32[1,37,512], index: 0, kind: input, shape index: {}]   ;;  %s2061_s1 = inlined_call_operand.vmem [shape: f32[56,128], index: 1, kind: input, shape index: {}]   ;;  %s2062_s2 = inlined_call_operand.vmem [shape: f32[1,4,512], index: 2, kind: output, shape index: {}]  }
   0x1   :  { %v19_v0 = vld [vmem:[%s2060_s0 + $0x8] sm:$0xff]  ;;  %v18_v2 = vld [vmem:[%s2060_s0] sm:$0xff]  ;;  %119 = vmatprep.mubr.f32.mxu0 %v1533_v3  ;;  %190 = vmatprep.mubr.f32.mxu1 %v1533_v3  ;;  %v21_v10 = vld [vmem:[%s2060_s0 + $0x18] sm:$0xff]  ;;  %vm209_vm3 = vcmask 39936   ;;  %v1534_v46 = vmov 0   ;;  %v1535_v47 = vmov 2  }
   0x2   :  { %v23_v1 = vld [vmem:[%s2060_s0 + $0x28] sm:$0xff]  ;;  %v22_v5 = vld [vmem:[%s2060_s0 + $0x20] sm:$0xff]  ;;  %v25_v11 = vld [vmem:[%s2060_s0 + $0x38] sm:$0xff]  ;;  %1486 = vset.pattern.permute.xlu1 %v1534_v46  ;;  %1488 = vset.pattern.permute.xlu0 %v1535_v47  ;;  %v1536_v48 = vmov 1   ;;  %v1537_v49 = vmov 3   ;;  %vm825_vm4 = vcmask 1043456  }
   0x3   :  { %v1461_v4 = vpack.c.bf16 %v23_v1, %v19_v0  ;;  %v27_v6 = vld [vmem:[%s2060_s0 + $0x48] sm:$0xff]  ;;  %v1463_v8 = vpack.c.bf16 %v22_v5, %v18_v2  ;;  %v26_v12 = vld [vmem:[%s2060_s0 + $0x40] sm:$0xff]  ;;  %v1469_v13 = vpack.c.bf16 %v25_v11, %v21_v10  ;;  %v20_v15 = vld [vmem:[%s2060_s0 + $0x10] sm:$0xff]  ;;  %v1538_v10 = vmov 5  }
   0x4   :  { %v31_v7 = vld [vmem:[%s2060_s0 + $0x68] sm:$0xff]  ;;  %v30_v14 = vld [vmem:[%s2060_s0 + $0x60] sm:$0xff]  ;;  %v24_v16 = vld [vmem:[%s2060_s0 + $0x30] sm:$0xff]  ;;  %v1539_v11 = vmov 4   ;;  %vm814_vm11 = vcmask 1040384   ;;  %vm822_vm12 = vcmask 31744  }
   0x5   :  { %v1465_v9 = vpack.c.bf16 %v31_v7, %v27_v6  ;;  %1462 = vmatprep.subr.bf16.mxu0 %v1461_v4  ;;  %v1467_v17 = vpack.c.bf16 %v30_v14, %v26_v12  ;;  %v1471_v18 = vpack.c.bf16 %v24_v16, %v20_v15  ;;  %v29_v19 = vld [vmem:[%s2060_s0 + $0x58] sm:$0xff]  ;;  %1470 = vmatprep.subr.bf16.mxu1 %v1469_v13  ;;  %v28_v22 = vld [vmem:[%s2060_s0 + $0x50] sm:$0xff]  ;;  %v35_v24 = vld [vmem:[%s2060_s0 + $0x88] sm:$0x1f]  ;;  %v1540_v13 = vmov 6  }
   0x6   :  { %1464 = vmatpush1.bf16.msra.mxu0 %v1463_v8  ;;  %v33_v20 = vld [vmem:[%s2060_s0 + $0x78] sm:$0xff]  ;;  %v32_v23 = vld [vmem:[%s2060_s0 + $0x70] sm:$0xff]  ;;  %v34_v27 = vld [vmem:[%s2060_s0 + $0x80] sm:$0x1f]  ;;  %v1541_v15 = vmov 7   ;;  %vm1276_vm13 = vcmask 64512  }
   0x7   :  { %1466 = vmatprep.subr.bf16.mxu0 %v1465_v9  ;;  %v1473_v21 = vpack.c.bf16 %v33_v20, %v29_v19  ;;  %1472 = vmatpush1.bf16.msra.mxu1 %v1471_v18  ;;  %v1475_v25 = vpack.c.bf16 %v32_v23, %v28_v22  ;;  %v37_v26 = vld [vmem:[%s2060_s0 + $0x98] sm:$0x1f]  ;;  %v11_v28 = vld [vmem:[%s2061_s1] sm:$0xff]  ;;  %v36_v29 = vld [vmem:[%s2060_s0 + $0x90] sm:$0x1f]  ;;  %v458_v18 = vlaneseq }
   0x8   :  { %v12_v30 = vld [vmem:[%s2061_s1 + $0x8] sm:$0xff]  ;;  %v204_v31 = vrot.slane %v11_v28, 5  ;;  %v1636_v34 = vld [vmem:[%s2061_s1 + $0x10] sm:$0xff]  ;;  %v1669_v45 = vld [vmem:[%s2061_s1 + $0x18] sm:$0xff] }
   0x9   :  { %1474 = vmatprep.subr.bf16.mxu1 %v1473_v21  ;;  %v205_v32 = vrot.slane %v12_v30, 5  ;;  %v207_v42 = vrot.slane %v1636_v34, 5  ;;  %509 = vperm.xlu1 %1486, %v1669_v45   ;;  %v1714_v12 = vld [vmem:[%s2061_s1 + $0x20] sm:$0xff]  ;;  %v1731_v14 = vld [vmem:[%s2061_s1 + $0x28] sm:$0xff]  ;;  %v459_v19 = vshrl.u32 %v458_v18, 7 }
   0xa   :  { %1468 = vmatpush1.bf16.msra.mxu0 %v1467_v17  ;;  %542 = vperm.xlu0 %1488, %v1669_v45  }
   0xb   :  { %1439 = vmatprep.subr.msk.mxu0 %vm42_vm0, %v35_v24  ;;  %1476 = vmatpush1.bf16.msra.mxu1 %v1475_v25  ;;  %v206_v38 = vsel %vm203_vm2, %v204_v31, %v205_v32  ;;  %v208_v44 = vsel %vm203_vm2, %v205_v32, %v207_v42  ;;  %v1758_v22 = vsub.s32 5, %v459_v19  ;;  %v1760_v23 = vsub.s32 1, %v459_v19 }
   0xc   :  { %1442 = vmatprep.subr.msk.mxu1 %vm42_vm0, %v37_v26  ;;  %v1764_v25 = vsub.s32 6, %v459_v19  ;;  %v1766_v26 = vsub.s32 7, %v459_v19  ;;  %v1770_v31 = vsub.s32 0, %v459_v19  ;;  %v1784_v18 = vsub.s32 3, %v459_v19 }
   0xd   :  { %1487 = vset.pattern.permute.xlu1 %v1536_v48  ;;  %v471_v24 = vrot.slane %v1636_v34, %v1758_v22 }
   0xe   :  { %1440 = vmatpush1.msk.msra.mxu0 %vm42_vm0, %v34_v27  ;;  %1490 = vset.pattern.permute.xlu0 %v1534_v46  ;;  %v481_v32 = vrot.slane %v1636_v34, %v1764_v25 }
   0xf   :  { %1441 = vmatmul.mubr.msk.f32.vlgmr.msra.gmra.mrb[0].mxu0 %vm38_vm1, %v11_v28  ;;  %1443 = vmatpush1.msk.msra.mxu1 %vm42_vm0, %v36_v29 }
  0x10   :  { %290 = vmatprep.mubr.f32.mxu0 %v1533_v3  ;;  %1444 = vmatmul.mubr.msk.f32.vlgmr.msra.gmra.mrb[0].mxu1 %vm38_vm1, %v11_v28  ;;  %v461_v28 = vrot.slane %v1669_v45, %v1760_v23 }
  0x11   :  { %367 = vmatprep.mubr.f32.mxu1 %v1533_v3  ;;  %526 = vperm.xlu1 %1487, %v1669_v45  }
  0x15   :  { %1489 = vset.pattern.permute.xlu1 %v1537_v49 }
  0x16   :  { %558 = vperm.xlu1 %1489, %v1669_v45  }
  0x1a   :  { %1492 = vset.pattern.permute.xlu1 %v1535_v47 }
  0x88   :  { %v1750_v16 = vpop.permute.xlu1 %509 }
  0x89   :  { %v1754_v20 = vpop.permute.xlu0 %542 }
  0x90   :  { %v1752_v17 = vpop.permute.xlu1 %526 }
  0x95   :  { %v1756_v21 = vpop.permute.xlu1 %558 }
  0xe2   :  { %v1631_v33 = vpop.f32.mrb[0].mxu0 }
  0xe3   :  { %v1638_v35 = vpop.f32.mrb[1].mxu0  ;;  %v1641_v37 = vpop.f32.mrb[0].mxu1  ;;  %v197_v39 = vmax.f32 %v1631_v33, 0.0 }
  0xe4   :  { %v198_v36 = vmax.f32 %v1638_v35, 0.0  ;;  %v199_v40 = vmax.f32 %v1641_v37, 0.0  ;;  %v1646_v41 = vpop.f32.mrb[1].mxu1 }
  0xe5   :  { %v2063_v43 = vmax.f32 %v1646_v41, 0.0 }
  0xe6   :  { %1445 = vmatprep.subr.msk.mxu0 %vm42_vm0, %v198_v36 }
  0xe7   :  { %1446 = vmatpush1.msk.msra.mxu0 %vm42_vm0, %v197_v39  ;;  %1449 = vmatprep.subr.msk.mxu1 %vm42_vm0, %v2063_v43 }
  0xe8   :  { %1447 = vmatmul.mubr.msk.f32.vlgmr.msra.gmra.mrb[2].mxu0 %vm209_vm3, %v206_v38  ;;  %1450 = vmatpush1.msk.msra.mxu1 %vm42_vm0, %v199_v40 }
  0xe9   :  { %296 = vmatprep.mubr.f32.mxu0 %v1533_v3  ;;  %1451 = vmatmul.mubr.msk.f32.vlgmr.msra.gmra.mrb[2].mxu1 %vm209_vm3, %v206_v38  ;;  %v491_v38 = vrot.slane %v1636_v34, %v1766_v26 }
  0xea   :  { %373 = vmatprep.mubr.f32.mxu1 %v1533_v3 }
  0xec   :  { %1448 = vmatmul.mubr.msk.f32.gmra.mrb[4].mxu0 %vm209_vm3, %v208_v44 }
  0xed   :  { %1452 = vmatmul.mubr.msk.f32.gmra.mrb[4].mxu1 %vm209_vm3, %v208_v44 }
  0xee   :  { %894 = vmatprep.mubr.f32.mxu1 %v1533_v3 }
 0x1bb   :  { %v292_v50 = vpop.f32.mrb[2].mxu0 }
 0x1bc   :  { %v294_v51 = vpop.f32.mrb[3].mxu0  ;;  %v369_v53 = vpop.f32.mrb[2].mxu1  ;;  %v380_v2 = vmax.f32 %v292_v50, 0.0 }
 0x1bd   :  { %v381_v52 = vmax.f32 %v294_v51, 0.0  ;;  %v371_v54 = vpop.f32.mrb[3].mxu1  ;;  %v382_v5 = vmax.f32 %v369_v53, 0.0 }
 0x1be   :  { %v383_v0 = vmax.f32 %v371_v54, 0.0 }
 0x1bf   :  { %v298_v55 = vpop.f32.mrb[4].mxu0  ;;  %452 = vmatprep.mubr.f32.mxu0 %v381_v52  ;;  %v501_v52 = vrot.slane %v1669_v45, %v1770_v31 }
 0x1c0   :  { %v384_v56 = vmax.f32 %v298_v55, 0.0  ;;  %v300_v57 = vpop.f32.mrb[5].mxu0  ;;  %v1681_v59 = vpop.f32.mrb[4].mxu1 }
 0x1c1   :  { %v385_v58 = vmax.f32 %v300_v57, 0.0  ;;  %v377_v60 = vpop.f32.mrb[5].mxu1  ;;  %v386_v1 = vmax.f32 %v1681_v59, 0.0 }
 0x1c2   :  { %v387_v62 = vmax.f32 %v377_v60, 0.0  ;;  %v820_v63 = vrot.slane %v384_v56, 4 }
 0x1c3   :  { %v821_v61 = vrot.slane %v385_v58, 4  ;;  %388 = vmatprep.subr.mxu0 %v385_v58 }
 0x1c4   :  { %389 = vmatpush1.xpose.msra.mxu0 %v384_v56  ;;  %v1194_v4 = vrot.slane %v387_v62, 4 }
 0x1c5   :  { %1453 = vmatprep.subr.msk.mxu1 %vm825_vm4, %v821_v61  ;;  %901 = vmatprep.subr.mxu0 %v387_v62 }
 0x1c6   :  { %1454 = vmatpush1.msk.msra.mxu1 %vm825_vm4, %v820_v63 }
 0x1c7   :  { %453 = vmatmul.mubr.f32.vlgmr.msra.gmra.mrb[6].mxu0 %v380_v2  ;;  %1456 = vmatprep.subr.msk.mxu1 %vm825_vm4, %v1194_v4  ;;  %v1780_v4 = vsub.s32 2, %v459_v19 }
 0x1c8   :  { %902 = vmatpush1.xpose.msra.mxu0 %v386_v1  ;;  %965 = vmatprep.mubr.f32.mxu0 %v383_v0 }
 0x1cb   :  { %966 = vmatmul.mubr.f32.vlgmr.msra.gmra.mrb[8].mxu0 %v382_v5 }
 0x1cc   :  { %1343 = vmatprep.mubr.f32.mxu0 %v1533_v3 }
 0x29a   :  { %v1690_v6 = vpop.f32.mrb[6].mxu0 }
 0x29b   :  { %485 = vperm.xlu1 %1492, %v1690_v6   ;;  %465 = vperm.xlu0 %1490, %v1690_v6   ;;  %v456_v7 = vpop.f32.mrb[7].mxu0  ;;  %v462_v42 = vadd.f32 %v461_v28, %v1690_v6 }
 0x29e   :  { %v1694_v8 = vpop.f32.mrb[8].mxu0 }
 0x29f   :  { %1493 = vset.pattern.permute.xlu1 %v1537_v49  ;;  %1491 = vset.pattern.permute.xlu0 %v1536_v48  ;;  %v969_v9 = vpop.f32.mrb[9].mxu0  ;;  %v971_v62 = vadd.f32 %v1694_v8, %v461_v28 }
 0x2a0   :  { %495 = vperm.xlu1 %1493, %v1690_v6   ;;  %475 = vperm.xlu0 %1491, %v1690_v6  }
 0x2a4   :  { %1494 = vset.pattern.permute.xlu1 %v1534_v46  ;;  %980 = vperm.xlu0 %1491, %v1694_v8  }
 0x2a5   :  { %974 = vperm.xlu1 %1494, %v1694_v8  }
 0x2a8   :  { %1497 = vset.pattern.permute.xlu0 %v1537_v49 }
 0x2a9   :  { %992 = vperm.xlu0 %1497, %v1694_v8   ;;  %1495 = vset.pattern.permute.xlu1 %v1535_v47 }
 0x2aa   :  { %986 = vperm.xlu1 %1495, %v1694_v8  }
 0x2ad   :  { %1498 = vset.pattern.permute.xlu0 %v1538_v10 }
 0x2ae   :  { %590 = vperm.xlu0 %1498, %v1669_v45   ;;  %1496 = vset.pattern.permute.xlu1 %v1539_v11 }
 0x2af   :  { %574 = vperm.xlu1 %1496, %v1669_v45  }
 0x2b2   :  { %1501 = vset.pattern.permute.xlu0 %v1540_v13 }
 0x2b3   :  { %606 = vperm.xlu0 %1501, %v1669_v45   ;;  %1499 = vset.pattern.permute.xlu1 %v1534_v46 }
 0x2b4   :  { %514 = vperm.xlu1 %1499, %v1714_v12  }
 0x2b7   :  { %1504 = vset.pattern.permute.xlu0 %v1537_v49 }
 0x2b8   :  { %562 = vperm.xlu0 %1504, %v1714_v12   ;;  %1500 = vset.pattern.permute.xlu1 %v1536_v48 }
 0x2b9   :  { %530 = vperm.xlu1 %1500, %v1714_v12  }
 0x2bc   :  { %1507 = vset.pattern.permute.xlu0 %v1540_v13 }
 0x2bd   :  { %610 = vperm.xlu0 %1507, %v1714_v12   ;;  %1502 = vset.pattern.permute.xlu1 %v1535_v47 }
 0x2be   :  { %546 = vperm.xlu1 %1502, %v1714_v12  }
 0x2c1   :  { %1510 = vset.pattern.permute.xlu0 %v1535_v47 }
 0x2c2   :  { %1503 = vset.pattern.permute.xlu1 %v1541_v15  ;;  %741 = vperm.xlu0 %1510, %v1731_v14  }
 0x2c3   :  { %622 = vperm.xlu1 %1503, %v1669_v45  }
 0x2c6   :  { %1511 = vset.pattern.permute.xlu0 %v1536_v48 }
 0x2c7   :  { %1505 = vset.pattern.permute.xlu1 %v1539_v11  ;;  %729 = vperm.xlu0 %1511, %v1731_v14  }
 0x2c8   :  { %578 = vperm.xlu1 %1505, %v1714_v12  }
 0x2cc   :  { %1506 = vset.pattern.permute.xlu1 %v1538_v10 }
 0x2cd   :  { %594 = vperm.xlu1 %1506, %v1714_v12  }
 0x2d1   :  { %1508 = vset.pattern.permute.xlu1 %v1541_v15 }
 0x2d2   :  { %626 = vperm.xlu1 %1508, %v1714_v12  }
 0x2d6   :  { %1509 = vset.pattern.permute.xlu1 %v1534_v46 }
 0x2d7   :  { %717 = vperm.xlu1 %1509, %v1731_v14  }
 0x2db   :  { %1512 = vset.pattern.permute.xlu1 %v1537_v49 }
 0x2dc   :  { %753 = vperm.xlu1 %1512, %v1731_v14  }
 0x2e0   :  { %1513 = vset.pattern.permute.xlu1 %v1534_v46 }
 0x31a   :  { %v486_v27 = vpop.permute.xlu1 %485  ;;  %v466_v29 = vpop.permute.xlu0 %465 }
 0x31b   :  { %v472_v30 = vmul.f32 %v471_v24, %v466_v29  ;;  %v492_v54 = vmul.f32 %v491_v38, %v486_v27 }
 0x31d   :  { %v473_v51 = vadd.f32 %v472_v30, %v462_v42 }
 0x31f   :  { %v496_v44 = vpop.permute.xlu1 %495  ;;  %v476_v50 = vpop.permute.xlu0 %475 }
 0x320   :  { %v482_v53 = vmul.f32 %v481_v32, %v476_v50  ;;  %v502_v56 = vmul.f32 %v501_v52, %v496_v44 }
 0x322   :  { %v483_v55 = vadd.f32 %v482_v53, %v473_v51 }
 0x323   :  { %v981_v63 = vpop.permute.xlu0 %980 }
 0x324   :  { %v493_v57 = vadd.f32 %v492_v54, %v483_v55  ;;  %v975_v58 = vpop.permute.xlu1 %974  ;;  %v983_v6 = vmul.f32 %v981_v63, %v481_v32  ;;  %v1793_v54 = vsub.s32 4, %v459_v19 }
 0x325   :  { %v977_v60 = vmul.f32 %v975_v58, %v471_v24 }
 0x326   :  { %v503_v61 = vadd.f32 %v502_v56, %v493_v57 }
 0x327   :  { %v978_v0 = vadd.f32 %v977_v60, %v971_v62 }
 0x328   :  { %vm504_vm5 = vcmp.ge.f32.partialorder %v503_v61, 0.0  ;;  %v505_v34 = vmul.f32 0.2, %v503_v61  ;;  %v993_v42 = vpop.permute.xlu0 %992 }
 0x329   :  { %v987_v2 = vpop.permute.xlu1 %986  ;;  %v984_v9 = vadd.f32 %v983_v6, %v978_v0  ;;  %v995_v51 = vmul.f32 %v993_v42, %v501_v52 }
 0x32a   :  { %v506_v5 = vsel %vm504_vm5, %v503_v61, %v505_v34  ;;  %v989_v24 = vmul.f32 %v987_v2, %v491_v38 }
 0x32b   :  { %v520_v45 = vrot.slane %v506_v5, %v1770_v31  ;;  %v536_v7 = vrot.slane %v506_v5, %v1760_v23  ;;  %v552_v28 = vrot.slane %v506_v5, %v1780_v4  ;;  %v568_v50 = vrot.slane %v506_v5, %v1784_v18 }
 0x32c   :  { %v990_v44 = vadd.f32 %v989_v24, %v984_v9  ;;  %v584_v58 = vrot.slane %v506_v5, %v1793_v54  ;;  %v600_v63 = vrot.slane %v506_v5, %v1758_v22  ;;  %v616_v9 = vrot.slane %v506_v5, %v1764_v25 }
 0x32d   :  { %v521_v27 = vmul.f32 %v520_v45, %v1750_v16  ;;  %v537_v8 = vmul.f32 %v536_v7, %v1752_v17  ;;  %v553_v32 = vmul.f32 %v552_v28, %v1754_v20  ;;  %v569_v56 = vmul.f32 %v568_v50, %v1756_v21  ;;  %v1799_v60 = vpop.permute.xlu0 %590 }
 0x32e   :  { %v1789_v29 = vpop.permute.xlu1 %574  ;;  %v996_v55 = vadd.f32 %v995_v51, %v990_v44  ;;  %v601_v0 = vmul.f32 %v600_v63, %v1799_v60  ;;  %v632_v44 = vrot.slane %v506_v5, %v1766_v26 }
 0x32f   :  { %v539_v30 = vadd.f32 %v537_v8, %v521_v27  ;;  %v585_v52 = vmul.f32 %v584_v58, %v1789_v29 }
 0x330   :  { %v998_v62 = vmul.f32 0.2, %v996_v55  ;;  %vm997_vm6 = vcmp.ge.f32.partialorder %v996_v55, 0.0 }
 0x331   :  { %v555_v53 = vadd.f32 %v553_v32, %v539_v30 }
 0x332   :  { %v1805_v34 = vsel %vm997_vm6, %v996_v55, %v998_v62  ;;  %v1810_v6 = vpop.permute.xlu0 %606 }
 0x333   :  { %v1795_v38 = vpop.permute.xlu1 %514  ;;  %v571_v57 = vadd.f32 %v569_v56, %v555_v53  ;;  %v1003_v27 = vrot.slane %v1805_v34, %v1770_v31  ;;  %v1011_v8 = vrot.slane %v1805_v34, %v1760_v23  ;;  %v617_v30 = vmul.f32 %v616_v9, %v1810_v6 }
 0x334   :  { %v522_v53 = vmul.f32 %v520_v45, %v1795_v38 }
 0x335   :  { %v587_v19 = vadd.f32 %v585_v52, %v571_v57  ;;  %v1004_v57 = vmul.f32 %v1003_v27, %v1750_v16  ;;  %v1012_v62 = vmul.f32 %v1011_v8, %v1752_v17 }
 0x337   :  { %v603_v24 = vadd.f32 %v601_v0, %v587_v19  ;;  %v1831_v5 = vpop.permute.xlu0 %562 }
 0x338   :  { %v1801_v61 = vpop.permute.xlu1 %530  ;;  %v570_v17 = vmul.f32 %v568_v50, %v1831_v5 }
 0x339   :  { %v538_v42 = vmul.f32 %v536_v7, %v1801_v61  ;;  %v619_v51 = vadd.f32 %v617_v30, %v603_v24  ;;  %v1019_v7 = vrot.slane %v1805_v34, %v1780_v4  ;;  %v1013_v16 = vmul.f32 %v1011_v8, %v1801_v61 }
 0x33b   :  { %v540_v52 = vadd.f32 %v538_v42, %v522_v53  ;;  %v1020_v30 = vmul.f32 %v1019_v7, %v1754_v20  ;;  %v1027_v42 = vrot.slane %v1805_v34, %v1784_v18 }
 0x33d   :  { %v1808_v2 = vpop.permute.xlu1 %546 }
 0x33e   :  { %v554_v55 = vmul.f32 %v552_v28, %v1808_v2  ;;  %v1014_v28 = vadd.f32 %v1012_v62, %v1004_v57  ;;  %v1021_v53 = vmul.f32 %v1019_v7, %v1808_v2  ;;  %v1847_v57 = vpop.permute.xlu0 %610  ;;  %v1035_v62 = vrot.slane %v1805_v34, %v1793_v54 }
 0x33f   :  { %v1043_v7 = vrot.slane %v1805_v34, %v1758_v22 }
 0x340   :  { %v556_v0 = vadd.f32 %v554_v55, %v540_v52 }
 0x342   :  { %v1820_v32 = vpop.permute.xlu1 %622  ;;  %v572_v55 = vadd.f32 %v570_v17, %v556_v0  ;;  %v618_v0 = vmul.f32 %v616_v9, %v1847_v57  ;;  %v1029_v17 = vmul.f32 %v1027_v42, %v1831_v5 }
 0x343   :  { %v633_v56 = vmul.f32 %v632_v44, %v1820_v32 }
 0x345   :  { %v1827_v19 = vadd.f32 %v633_v56, %v619_v51  ;;  %v1005_v51 = vmul.f32 %v1003_v27, %v1795_v38  ;;  %v1022_v56 = vadd.f32 %v1020_v30, %v1014_v28  ;;  %v1028_v27 = vmul.f32 %v1027_v42, %v1756_v21 }
 0x346   :  { %v1051_v42 = vrot.slane %v1805_v34, %v1764_v25 }
 0x347   :  { %662 = vperm.xlu0 %1511, %v1827_v19   ;;  %645 = vperm.xlu1 %1513, %v1827_v19   ;;  %v1835_v45 = vpop.permute.xlu1 %578  ;;  %v1015_v8 = vadd.f32 %v1013_v16, %v1005_v51  ;;  %v1030_v16 = vadd.f32 %v1028_v27, %v1022_v56 }
 0x348   :  { %v586_v24 = vmul.f32 %v584_v58, %v1835_v45  ;;  %v1037_v30 = vmul.f32 %v1035_v62, %v1835_v45  ;;  %v1053_v27 = vmul.f32 %v1051_v42, %v1847_v57 }
 0x349   :  { %v1023_v52 = vadd.f32 %v1021_v53, %v1015_v8 }
 0x34a   :  { %v588_v50 = vadd.f32 %v586_v24, %v572_v55  ;;  %v1036_v24 = vmul.f32 %v1035_v62, %v1789_v29  ;;  %v1052_v62 = vmul.f32 %v1051_v42, %v1810_v6 }
 0x34b   :  { %1515 = vset.pattern.permute.xlu0 %v1537_v49  ;;  %1514 = vset.pattern.permute.xlu1 %v1535_v47  ;;  %v1031_v51 = vadd.f32 %v1029_v17, %v1023_v52  ;;  %v1940_v17 = vrot.slane %v1714_v12, %v1793_v54 }
 0x34c   :  { %694 = vperm.xlu0 %1515, %v1827_v19   ;;  %678 = vperm.xlu1 %1514, %v1827_v19   ;;  %v1851_v20 = vpop.permute.xlu1 %594  ;;  %v1038_v55 = vadd.f32 %v1036_v24, %v1030_v16  ;;  %v1945_v24 = vrot.slane %v1714_v12, %v1758_v22 }
 0x34d   :  { %v602_v58 = vmul.f32 %v600_v63, %v1851_v20  ;;  %v1045_v53 = vmul.f32 %v1043_v7, %v1851_v20  ;;  %v1039_v56 = vadd.f32 %v1037_v30, %v1031_v51 }
 0x34f   :  { %v604_v28 = vadd.f32 %v602_v58, %v588_v50  ;;  %v1044_v50 = vmul.f32 %v1043_v7, %v1799_v60  ;;  %v1047_v58 = vadd.f32 %v1045_v53, %v1039_v56 }
 0x350   :  { %1516 = vset.pattern.permute.xlu0 %v1534_v46  ;;  %1517 = vset.pattern.permute.xlu1 %v1536_v48 }
 0x351   :  { %v620_v21 = vadd.f32 %v618_v0, %v604_v28  ;;  %v1864_v63 = vpop.permute.xlu1 %626  ;;  %v1046_v29 = vadd.f32 %v1044_v50, %v1038_v55  ;;  %v1055_v0 = vadd.f32 %v1053_v27, %v1047_v58 }
 0x352   :  { %v634_v9 = vmul.f32 %v632_v44, %v1864_v63  ;;  %v1059_v44 = vrot.slane %v1805_v34, %v1766_v26 }
 0x353   :  { %v1054_v60 = vadd.f32 %v1052_v62, %v1046_v29 }
 0x354   :  { %v1869_v8 = vadd.f32 %v634_v9, %v620_v21  ;;  %v1060_v52 = vmul.f32 %v1059_v44, %v1820_v32  ;;  %v1061_v28 = vmul.f32 %v1059_v44, %v1864_v63 }
 0x356   :  { %666 = vperm.xlu1 %1517, %v1869_v8   ;;  %650 = vperm.xlu0 %1516, %v1869_v8   ;;  %v1886_v7 = vadd.f32 %v1060_v52, %v1054_v60  ;;  %v1888_v16 = vadd.f32 %v1061_v28, %v1055_v0 }
 0x35a   :  { %1519 = vset.pattern.permute.xlu1 %v1537_v49  ;;  %1518 = vset.pattern.permute.xlu0 %v1535_v47 }
 0x35b   :  { %698 = vperm.xlu1 %1519, %v1869_v8   ;;  %682 = vperm.xlu0 %1518, %v1869_v8  }
 0x35f   :  { %1520 = vset.pattern.permute.xlu1 %v1534_v46  ;;  %1529 = vset.pattern.permute.xlu0 %v1537_v49 }
 0x360   :  { %1109 = vperm.xlu0 %1529, %v1888_v16   ;;  %1068 = vperm.xlu1 %1520, %v1886_v7  }
 0x364   :  { %1521 = vset.pattern.permute.xlu1 %v1536_v48  ;;  %1530 = vset.pattern.permute.xlu0 %v1540_v13  ;;  %v1933_v13 = vrot.slane %v1714_v12, %v1784_v18 }
 0x365   :  { %1081 = vperm.xlu1 %1521, %v1886_v7   ;;  %789 = vperm.xlu0 %1530, %v1731_v14  }
 0x369   :  { %1522 = vset.pattern.permute.xlu1 %v1535_v47  ;;  %1532 = vset.pattern.permute.xlu0 %v1537_v49 }
 0x36a   :  { %1093 = vperm.xlu1 %1522, %v1886_v7  }
 0x36e   :  { %1523 = vset.pattern.permute.xlu1 %v1537_v49 }
 0x36f   :  { %1105 = vperm.xlu1 %1523, %v1886_v7  }
 0x373   :  { %1524 = vset.pattern.permute.xlu1 %v1534_v46  ;;  %v1915_v46 = vpop.permute.xlu0 %741 }
 0x374   :  { %1073 = vperm.xlu1 %1524, %v1888_v16  }
 0x377   :  { %v1919_v49 = vpop.permute.xlu0 %729 }
 0x378   :  { %1525 = vset.pattern.permute.xlu1 %v1536_v48  ;;  %v1917_v48 = vpop.permute.xlu1 %717 }
 0x379   :  { %1085 = vperm.xlu1 %1525, %v1888_v16  }
 0x37d   :  { %1526 = vset.pattern.permute.xlu1 %v1535_v47  ;;  %v1921_v47 = vpop.permute.xlu1 %753 }
 0x37e   :  { %1097 = vperm.xlu1 %1526, %v1888_v16  }
 0x382   :  { %1527 = vset.pattern.permute.xlu1 %v1539_v11  ;;  %v1925_v11 = vrot.slane %v1714_v12, %v1764_v25 }
 0x383   :  { %765 = vperm.xlu1 %1527, %v1731_v14  }
 0x384   :  { %v641_v6 = vadd.f32 %v1925_v11, %v1827_v19  ;;  %v642_v52 = vadd.f32 %v1925_v11, %v1869_v8 }
 0x387   :  { %1528 = vset.pattern.permute.xlu1 %v1538_v10  ;;  %v1929_v10 = vrot.slane %v1714_v12, %v1780_v4 }
 0x388   :  { %777 = vperm.xlu1 %1528, %v1731_v14  }
 0x38c   :  { %1531 = vset.pattern.permute.xlu1 %v1541_v15 }
 0x38d   :  { %801 = vperm.xlu1 %1531, %v1731_v14  }
 0x3c6   :  { %v663_v15 = vpop.permute.xlu0 %662  ;;  %v646_v34 = vpop.permute.xlu1 %645 }
 0x3c7   :  { %v657_v32 = vmul.f32 %v1929_v10, %v646_v34  ;;  %v673_v30 = vmul.f32 %v1933_v13, %v663_v15 }
 0x3c9   :  { %v659_v21 = vadd.f32 %v657_v32, %v641_v6 }
 0x3cb   :  { %v695_v51 = vpop.permute.xlu0 %694  ;;  %v675_v53 = vadd.f32 %v673_v30, %v659_v21  ;;  %v679_v9 = vpop.permute.xlu1 %678 }
 0x3cc   :  { %v689_v55 = vmul.f32 %v1940_v17, %v679_v9  ;;  %v705_v19 = vmul.f32 %v1945_v24, %v695_v51 }
 0x3ce   :  { %v691_v56 = vadd.f32 %v689_v55, %v675_v53 }
 0x3d0   :  { %v707_v42 = vadd.f32 %v705_v19, %v691_v56 }
 0x3d2   :  { %vm709_vm7 = vcmp.ge.f32.partialorder %v707_v42, 0.0  ;;  %v711_v50 = vmul.f32 0.2, %v707_v42 }
 0x3d4   :  { %v713_v58 = vsel %vm709_vm7, %v707_v42, %v711_v50 }
 0x3d5   :  { %v651_v29 = vpop.permute.xlu0 %650  ;;  %v667_v27 = vpop.permute.xlu1 %666  ;;  %v723_v44 = vrot.slane %v713_v58, %v1780_v4  ;;  %v735_v62 = vrot.slane %v713_v58, %v1784_v18  ;;  %v1952_v12 = vrot.slane %v713_v58, %v1793_v54  ;;  %v1961_v6 = vrot.slane %v713_v58, %v1758_v22 }
 0x3d6   :  { %v658_v0 = vmul.f32 %v1929_v10, %v651_v29  ;;  %v674_v34 = vmul.f32 %v1933_v13, %v667_v27  ;;  %v1969_v19 = vrot.slane %v713_v58, %v1764_v25 }
 0x3d7   :  { %v724_v28 = vmul.f32 %v723_v44, %v1795_v38  ;;  %v736_v60 = vmul.f32 %v735_v62, %v1801_v61  ;;  %v748_v30 = vmul.f32 %v1952_v12, %v1808_v2  ;;  %v760_v55 = vmul.f32 %v1961_v6, %v1831_v5 }
 0x3d8   :  { %v660_v15 = vadd.f32 %v658_v0, %v642_v52  ;;  %v772_v52 = vmul.f32 %v1969_v19, %v1835_v45  ;;  %v1975_v0 = vrot.slane %v713_v58, %v1766_v26 }
 0x3d9   :  { %v738_v32 = vadd.f32 %v736_v60, %v724_v28 }
 0x3da   :  { %v676_v21 = vadd.f32 %v674_v34, %v660_v15  ;;  %v683_v51 = vpop.permute.xlu0 %682  ;;  %v699_v53 = vpop.permute.xlu1 %698 }
 0x3db   :  { %v690_v8 = vmul.f32 %v1940_v17, %v683_v51  ;;  %v750_v9 = vadd.f32 %v748_v30, %v738_v32  ;;  %v706_v42 = vmul.f32 %v1945_v24, %v699_v53  ;;  %v784_v30 = vmul.f32 %v1975_v0, %v1851_v20 }
 0x3dd   :  { %v692_v56 = vadd.f32 %v690_v8, %v676_v21  ;;  %v762_v50 = vadd.f32 %v760_v55, %v750_v9  ;;  %v1064_v55 = vadd.f32 %v1886_v7, %v1925_v11 }
 0x3df   :  { %v708_v29 = vadd.f32 %v706_v42, %v692_v56  ;;  %v1069_v27 = vpop.permute.xlu1 %1068  ;;  %v774_v60 = vadd.f32 %v772_v52, %v762_v50 }
 0x3e0   :  { %v1076_v58 = vmul.f32 %v1069_v27, %v1929_v10 }
 0x3e1   :  { %v712_v28 = vmul.f32 0.2, %v708_v29  ;;  %vm710_vm8 = vcmp.ge.f32.partialorder %v708_v29, 0.0  ;;  %v786_v53 = vadd.f32 %v784_v30, %v774_v60 }
 0x3e3   :  { %v714_v15 = vsel %vm710_vm8, %v708_v29, %v712_v28  ;;  %v1078_v29 = vadd.f32 %v1076_v58, %v1064_v55 }
 0x3e4   :  { %v1082_v34 = vpop.permute.xlu1 %1081  ;;  %v1978_v32 = vrot.slane %v714_v15, %v1770_v31  ;;  %v1983_v21 = vrot.slane %v714_v15, %v1760_v23 }
 0x3e5   :  { %v1088_v56 = vmul.f32 %v1082_v34, %v1933_v13 }
 0x3e6   :  { %v796_v51 = vmul.f32 %v1978_v32, %v1847_v57  ;;  %v808_v9 = vmul.f32 %v1983_v21, %v1864_v63 }
 0x3e7   :  { %v1090_v28 = vadd.f32 %v1088_v56, %v1078_v29  ;;  %v725_v29 = vmul.f32 %v723_v44, %v1917_v48 }
 0x3e8   :  { %v798_v8 = vadd.f32 %v796_v51, %v786_v53 }
 0x3e9   :  { %v1094_v42 = vpop.permute.xlu1 %1093 }
 0x3ea   :  { %v1993_v50 = vadd.f32 %v808_v9, %v798_v8  ;;  %v1100_v52 = vmul.f32 %v1094_v42, %v1940_v17  ;;  %v1065_v42 = vadd.f32 %v1888_v16, %v1925_v11 }
 0x3ec   :  { %v1102_v60 = vadd.f32 %v1100_v52, %v1090_v28  ;;  %v737_v52 = vmul.f32 %v735_v62, %v1919_v49 }
 0x3ee   :  { %v1106_v15 = vpop.permute.xlu1 %1105  ;;  %v739_v44 = vadd.f32 %v737_v52, %v725_v29 }
 0x3ef   :  { %v1112_v27 = vmul.f32 %v1106_v15, %v1945_v24 }
 0x3f1   :  { %v1114_v30 = vadd.f32 %v1112_v27, %v1102_v60 }
 0x3f3   :  { %vm1116_vm9 = vcmp.ge.f32.partialorder %v1114_v30, 0.0  ;;  %v1118_v51 = vmul.f32 0.2, %v1114_v30  ;;  %v1074_v53 = vpop.permute.xlu1 %1073 }
 0x3f4   :  { %v1077_v58 = vmul.f32 %v1074_v53, %v1929_v10 }
 0x3f5   :  { %v1120_v43 = vsel %vm1116_vm9, %v1114_v30, %v1118_v51 }
 0x3f6   :  { %v1125_v7 = vrot.slane %v1120_v43, %v1780_v4  ;;  %v1133_v34 = vrot.slane %v1120_v43, %v1784_v18  ;;  %v1141_v8 = vrot.slane %v1120_v43, %v1793_v54  ;;  %v1079_v15 = vadd.f32 %v1077_v58, %v1065_v42 }
 0x3f8   :  { %v1086_v9 = vpop.permute.xlu1 %1085  ;;  %v1126_v55 = vmul.f32 %v1125_v7, %v1795_v38  ;;  %v1134_v56 = vmul.f32 %v1133_v34, %v1801_v61  ;;  %v1127_v18 = vmul.f32 %v1125_v7, %v1917_v48  ;;  %v1135_v54 = vmul.f32 %v1133_v34, %v1919_v49  ;;  %v1110_v61 = vpop.permute.xlu0 %1109 }
 0x3f9   :  { %v1089_v4 = vmul.f32 %v1086_v9, %v1933_v13  ;;  %v1142_v10 = vmul.f32 %v1141_v8, %v1808_v2  ;;  %v1149_v38 = vrot.slane %v1120_v43, %v1758_v22  ;;  %v1157_v48 = vrot.slane %v1120_v43, %v1764_v25 }
 0x3fa   :  { %v1136_v28 = vadd.f32 %v1134_v56, %v1126_v55  ;;  %v1137_v62 = vadd.f32 %v1135_v54, %v1127_v18  ;;  %v1113_v49 = vmul.f32 %v1110_v61, %v1945_v24  ;;  %v749_v2 = vmul.f32 %v1952_v12, %v1915_v46 }
 0x3fb   :  { %v1091_v16 = vadd.f32 %v1089_v4, %v1079_v15  ;;  %v1150_v13 = vmul.f32 %v1149_v38, %v1831_v5  ;;  %v1143_v22 = vmul.f32 %v1141_v8, %v1915_v46  ;;  %v1151_v5 = vmul.f32 %v1149_v38, %v1921_v47 }
 0x3fc   :  { %v1144_v27 = vadd.f32 %v1142_v10, %v1136_v28  ;;  %v751_v7 = vadd.f32 %v749_v2, %v739_v44  ;;  %v1158_v25 = vmul.f32 %v1157_v48, %v1835_v45  ;;  %v1165_v24 = vrot.slane %v1120_v43, %v1766_v26  ;;  %v790_v29 = vpop.permute.xlu0 %789 }
 0x3fd   :  { %v1098_v60 = vpop.permute.xlu1 %1097  ;;  %v1145_v58 = vadd.f32 %v1143_v22, %v1137_v62  ;;  %v797_v10 = vmul.f32 %v1978_v32, %v790_v29 }
 0x3fe   :  { %v1101_v11 = vmul.f32 %v1098_v60, %v1940_v17  ;;  %v1152_v51 = vadd.f32 %v1150_v13, %v1144_v27  ;;  %v761_v17 = vmul.f32 %v1961_v6, %v1921_v47  ;;  %v1166_v4 = vmul.f32 %v1165_v24, %v1851_v20 }
 0x3ff   :  { %v1153_v56 = vadd.f32 %v1151_v5, %v1145_v58 }
 0x400   :  { %v1103_v30 = vadd.f32 %v1101_v11, %v1091_v16  ;;  %v1160_v46 = vadd.f32 %v1158_v25, %v1152_v51  ;;  %v763_v8 = vadd.f32 %v761_v17, %v751_v7  ;;  %v2064_v25 = vmax.f32 %v1646_v41, 0.0 }
 0x402   :  { %v1115_v53 = vadd.f32 %v1113_v49, %v1103_v30  ;;  %v766_v34 = vpop.permute.xlu1 %765 }
 0x403   :  { %v773_v9 = vmul.f32 %v1969_v19, %v766_v34  ;;  %v1159_v55 = vmul.f32 %v1157_v48, %v766_v34  ;;  %v1168_v19 = vadd.f32 %v1166_v4, %v1160_v46 }
 0x404   :  { %vm1117_vm10 = vcmp.ge.f32.partialorder %v1115_v53, 0.0  ;;  %v1119_v12 = vmul.f32 0.2, %v1115_v53 }
 0x405   :  { %v775_v45 = vadd.f32 %v773_v9, %v763_v8  ;;  %v1161_v18 = vadd.f32 %v1159_v55, %v1153_v56 }
 0x406   :  { %v1121_v42 = vsel %vm1117_vm10, %v1115_v53, %v1119_v12 }
 0x407   :  { %v778_v52 = vpop.permute.xlu1 %777  ;;  %v1173_v6 = vrot.slane %v1121_v42, %v1770_v31  ;;  %v1181_v47 = vrot.slane %v1121_v42, %v1760_v23 }
 0x408   :  { %v785_v43 = vmul.f32 %v1975_v0, %v778_v52  ;;  %v1167_v26 = vmul.f32 %v1165_v24, %v778_v52 }
 0x409   :  { %v1174_v54 = vmul.f32 %v1173_v6, %v1847_v57  ;;  %v1175_v28 = vmul.f32 %v1173_v6, %v790_v29  ;;  %v1182_v61 = vmul.f32 %v1181_v47, %v1864_v63  ;;  %v815_v57 = vrot.slane %v1993_v50, 7 }
 0x40a   :  { %v787_v38 = vadd.f32 %v785_v43, %v775_v45  ;;  %v1169_v15 = vadd.f32 %v1167_v26, %v1161_v18  ;;  %v1193_v63 = vrot.slane %v386_v1, 4  ;;  %v1273_v50 = vrot.slane %v1731_v14, 7 }
 0x40b   :  { %v1176_v20 = vadd.f32 %v1174_v54, %v1168_v19 }
 0x40c   :  { %v799_v60 = vadd.f32 %v797_v10, %v787_v38  ;;  %v802_v31 = vpop.permute.xlu1 %801  ;;  %v1177_v27 = vadd.f32 %v1175_v28, %v1169_v15 }
 0x40d   :  { %v809_v23 = vmul.f32 %v1983_v21, %v802_v31  ;;  %v1183_v16 = vmul.f32 %v1181_v47, %v802_v31  ;;  %v1184_v11 = vadd.f32 %v1182_v61, %v1176_v20  ;;  %v17_v21 = vld [vmem:[%s2061_s1 + $0x30] sm:$0xff] }
 0x40e   :  { %v1274_v59 = vrot.slane %v17_v21, 7 }
 0x40f   :  { %v811_v0 = vadd.f32 %v809_v23, %v799_v60  ;;  %v1185_v44 = vadd.f32 %v1183_v16, %v1177_v27  ;;  %v1188_v32 = vrot.slane %v1184_v11, 7 }
 0x410   :  { %v1275_v2 = vsel %vm814_vm11, %v1273_v50, %v1274_v59 }
 0x411   :  { %v816_v62 = vrot.slane %v811_v0, 7  ;;  %v1189_v13 = vrot.slane %v1185_v44, 7 }
 0x413   :  { %v817_v48 = vsel %vm814_vm11, %v815_v57, %v816_v62  ;;  %v1190_v49 = vsel %vm814_vm11, %v1188_v32, %v1189_v13 }
 0x414   :  { %1455 = vmatmul.mubr.msk.f32.vlgmr.msra.gmra.mrb[6].mxu1 %vm822_vm12, %v817_v48 }
 0x415   :  { %1457 = vmatpush1.msk.msra.mxu1 %vm825_vm4, %v1193_v63  ;;  %1265 = vmatprep.mubr.f32.mxu1 %v1533_v3 }
 0x418   :  { %1458 = vmatmul.mubr.msk.f32.vlgmr.msra.gmra.mrb[8].mxu1 %vm822_vm12, %v1190_v49 }
 0x419   :  { %1414 = vmatprep.mubr.f32.mxu1 %v1533_v3 }
 0x4e7   :  { %v896_v1 = vpop.f32.mrb[6].mxu1 }
 0x4e8   :  { %v898_v30 = vpop.f32.mrb[7].mxu1 }
 0x4e9   :  { %1279 = vmatprep.subr.mxu0 %v898_v30 }
 0x4ea   :  { %1280 = vmatpush1.msra.mxu0 %v896_v1 }
 0x4eb   :  { %v1267_v22 = vpop.f32.mrb[8].mxu1  ;;  %1459 = vmatmul.mubr.msk.f32.vlgmr.msra.gmra.mrb[10].mxu0 %vm1276_vm13, %v1275_v2 }
 0x4ec   :  { %v1269_v51 = vpop.f32.mrb[9].mxu1 }
 0x4ed   :  { %1350 = vmatprep.subr.mxu1 %v1269_v51 }
 0x4ee   :  { %1351 = vmatpush1.msra.mxu1 %v1267_v22 }
 0x4ef   :  { %1460 = vmatmul.mubr.msk.f32.vlgmr.msra.gmra.mrb[10].mxu1 %vm1276_vm13, %v1275_v2 }
 0x5be   :  { %v1345_v3 = vpop.f32.mrb[10].mxu0 }
 0x5bf   :  { %v1421_v53 = vadd.f32 %v1345_v3, %v197_v39  ;;  %v1347_v7 = vpop.f32.mrb[11].mxu0 }
 0x5c0   :  { %v1422_v14 = vadd.f32 %v1347_v7, %v198_v36 }
 0x5c2   :  { %v1429_v34 = vcombine.low %v1421_v53, %v1422_v14  ;;  %v1416_v58 = vpop.f32.mrb[10].mxu1 }
 0x5c3   :  { %v1423_v17 = vadd.f32 %v1416_v58, %v199_v40  ;;  %v1418_v5 = vpop.f32.mrb[11].mxu1 }
 0x5c4   :  { %1433 = vst [vmem:[%s2062_s2] sm:$0xff] %v1429_v34  ;;  %v1424_v24 = vadd.f32 %v1418_v5, %v2064_v25 }
 0x5c6   :  { %v1430_v9 = vcombine.low %v1423_v17, %v1424_v24 }
 0x5c8   :  { %1434 = vst [vmem:[%s2062_s2 + $0x8] sm:$0xff] %v1430_v9 }

</bundles_post_ra>
